<compile_context>
chip_gen: v7x
topology: tpu7x:2x2x1
jax: 0.10.0
libtpu: 0.0.40
codegen_flags: <defaults>
</compile_context>

<pallas_src>
import functools

import jax
import jax.numpy as jnp
from jax import lax
from jax.experimental import pallas as pl
from jax.experimental.pallas import tpu as pltpu

LPAD = 8  # sublane-aligned interior column offset inside the halo'd scratches


# ---------------------------------------------------------------------------
# Kernel helpers
# ---------------------------------------------------------------------------
def _conv3x3_accum(src_ref, w_ref, nrows, wo, acc, matmul_dtype):
    """acc += 3x3 conv of src_ref (nrows+2 halo'd rows) with w_ref (3,3,c,cout)."""
    c = src_ref.shape[2]
    for dy in range(3):
        for dx in range(3):
            tap = src_ref[dy:dy + nrows, LPAD - 1 + dx:LPAD - 1 + dx + wo, :]
            tap = tap.reshape(nrows * wo, c).astype(matmul_dtype)
            w_tap = w_ref[dy, dx].astype(matmul_dtype)          # (c, cout)
            acc = acc + jnp.dot(tap, w_tap,
                                preferred_element_type=jnp.float32)
    return acc


def _decoder_block_kernel(has_skip, matmul_dtype, *refs):
    if has_skip:
        (x_ref, skip_ref, w1x_ref, w1s_ref, w2_ref,
         s1_ref, b1_ref, s2_ref, b2_ref,
         o_ref, xs_ref, ss_ref, h1_ref) = refs
    else:
        (x_ref, w1x_ref, w2_ref,
         s1_ref, b1_ref, s2_ref, b2_ref,
         o_ref, xs_ref, h1_ref) = refs
        skip_ref = ss_ref = w1s_ref = None

    f32 = jnp.float32
    th = o_ref.shape[1]                    # output rows in this tile
    wo = o_ref.shape[2]
    cout = o_ref.shape[3]
    H, W, cin = x_ref.shape[1], x_ref.shape[2], x_ref.shape[3]
    ho = 2 * H
    hr = th // 2                           # x rows feeding this tile

    t = pl.program_id(1)
    nt = pl.num_programs(1)
    r0 = t * th                            # first output row of the tile (even)

    # 0.0 at the image top/bottom boundary (conv zero padding), else 1.0.
    m_top = jnp.where(t == 0, 0.0, 1.0).astype(f32)
    m_bot = jnp.where(t == nt - 1, 0.0, 1.0).astype(f32)

    # --- stage nearest-2x-upsampled x rows (2-row halo), W-aligned ----------
    xb = x_ref[0, pl.ds(t * hr, hr), :, :]                        # (hr, W, cin)
    xs_ref[2:th + 2, LPAD:LPAD + wo, :] = jnp.repeat(
        jnp.repeat(xb, 2, axis=0), 2, axis=1)
    xtop = jnp.repeat(x_ref[0, pl.ds(jnp.maximum(t * hr - 1, 0), 1), :, :],
                      2, axis=1)                                   # (1, wo, cin)
    xs_ref[0:2, LPAD:LPAD + wo, :] = m_top * jnp.broadcast_to(xtop, (2, wo, cin))
    xbot = jnp.repeat(x_ref[0, pl.ds(jnp.minimum((t + 1) * hr, H - 1), 1), :, :],
                      2, axis=1)
    xs_ref[th + 2:th + 4, LPAD:LPAD + wo, :] = m_bot * jnp.broadcast_to(
        xbot, (2, wo, cin))
    # left/right conv zero-padding columns (only columns ever read as halo).
    xs_ref[:, LPAD - 1:LPAD, :] = jnp.zeros((th + 4, 1, cin), f32)
    xs_ref[:, LPAD + wo:LPAD + wo + 1, :] = jnp.zeros((th + 4, 1, cin), f32)

    # --- stage skip rows (2-row halo) into a separate lane-aligned scratch --
    if has_skip:
        cskip = skip_ref.shape[3]
        ss_ref[2:th + 2, LPAD:LPAD + wo, :] = skip_ref[0, pl.ds(r0, th), :, :]
        ss_ref[0:2, LPAD:LPAD + wo, :] = m_top * skip_ref[
            0, pl.ds(jnp.maximum(r0 - 2, 0), 2), :, :]
        ss_ref[th + 2:th + 4, LPAD:LPAD + wo, :] = m_bot * skip_ref[
            0, pl.ds(jnp.minimum(r0 + th, ho - 2), 2), :, :]
        ss_ref[:, LPAD - 1:LPAD, :] = jnp.zeros((th + 4, 1, cskip), f32)
        ss_ref[:, LPAD + wo:LPAD + wo + 1, :] = jnp.zeros((th + 4, 1, cskip), f32)

    # --- conv1 + BN + ReLU over th+2 rows (1-row halo for conv2) ------------
    n1 = th + 2
    acc1 = jnp.zeros((n1 * wo, cout), f32)
    acc1 = _conv3x3_accum(xs_ref, w1x_ref, n1, wo, acc1, matmul_dtype)
    if has_skip:
        acc1 = _conv3x3_accum(ss_ref, w1s_ref, n1, wo, acc1, matmul_dtype)
    y1 = jnp.maximum(acc1 * s1_ref[...] + b1_ref[...], 0.0)
    h1_ref[0:n1, LPAD:LPAD + wo, :] = y1.reshape(n1, wo, cout)

    # conv2 zero padding: rows past the image top/bottom + the two columns.
    zrow = jnp.zeros((1, wo, cout), f32)

    @pl.when(t == 0)
    def _():
        h1_ref[0:1, LPAD:LPAD + wo, :] = zrow

    @pl.when(t == nt - 1)
    def _():
        h1_ref[n1 - 1:n1, LPAD:LPAD + wo, :] = zrow

    h1_ref[:, LPAD - 1:LPAD, :] = jnp.zeros((n1, 1, cout), f32)
    h1_ref[:, LPAD + wo:LPAD + wo + 1, :] = jnp.zeros((n1, 1, cout), f32)

    # --- conv2 + BN + ReLU over the th output rows ---------------------------
    acc2 = jnp.zeros((th * wo, cout), f32)
    acc2 = _conv3x3_accum(h1_ref, w2_ref, th, wo, acc2, matmul_dtype)
    y2 = jnp.maximum(acc2 * s2_ref[...] + b2_ref[...], 0.0)
    o_ref[0] = y2.reshape(th, wo, cout).astype(o_ref.dtype)


# ---------------------------------------------------------------------------
# Row-tile picker + wrapper (PyTorch-compatible NCHW interface)
# ---------------------------------------------------------------------------
def _pick_row_tile(Ho, Wo, cin, cskip, cout, budget_bytes=24 << 20, max_rows=64):
    wp = Wo + 2 * LPAD
    best = 2
    for th in range(2, min(Ho, max_rows) + 1, 2):
        if Ho % th:
            continue
        scratch = 4 * wp * ((th + 4) * (cin + cskip) + (th + 2) * cout)
        out_blk = 2 * 4 * th * Wo * cout
        acc = 4 * 4 * (th + 2) * Wo * cout
        if scratch + out_blk + acc <= budget_bytes:
            best = th
    if Ho % best:
        best = Ho
    return best


def decoder_block_forward(x_nchw, skip_nchw, params, *, row_tile=None,
                          matmul_dtype=jnp.float32):
    w1, s1, b1 = params["conv1"]   # (3,3,cin+cskip,cout), (cout,), (cout,)
    w2, s2, b2 = params["conv2"]   # (3,3,cout,cout),      (cout,), (cout,)

    N, cin, H, W = x_nchw.shape
    Ho, Wo = 2 * H, 2 * W
    has_skip = skip_nchw is not None
    cskip = skip_nchw.shape[1] if has_skip else 0
    cout = w1.shape[-1]
    assert w1.shape == (3, 3, cin + cskip, cout), w1.shape

    th = row_tile if row_tile is not None else _pick_row_tile(
        Ho, Wo, cin, cskip, cout)
    assert Ho % th == 0 and th % 2 == 0, (Ho, th)
    nt = Ho // th

    f32 = jnp.float32
    x = jnp.transpose(x_nchw, (0, 2, 3, 1)).astype(f32)          # NHWC
    w1 = w1.astype(f32)
    w1x = w1[:, :, :cin, :]
    w2 = w2.astype(f32)
    s1v, b1v = s1.reshape(1, cout).astype(f32), b1.reshape(1, cout).astype(f32)
    s2v, b2v = s2.reshape(1, cout).astype(f32), b2.reshape(1, cout).astype(f32)

    inputs = [x]
    in_specs = [pl.BlockSpec((1, H, W, cin), lambda n, t: (n, 0, 0, 0))]
    if has_skip:
        skip = jnp.transpose(skip_nchw, (0, 2, 3, 1)).astype(f32)
        inputs.append(skip)
        in_specs.append(
            pl.BlockSpec((1, Ho, Wo, cskip), lambda n, t: (n, 0, 0, 0)))

    inputs.append(w1x)
    in_specs.append(pl.BlockSpec((3, 3, cin, cout), lambda n, t: (0, 0, 0, 0)))
    if has_skip:
        w1s = w1[:, :, cin:, :]
        inputs.append(w1s)
        in_specs.append(
            pl.BlockSpec((3, 3, cskip, cout), lambda n, t: (0, 0, 0, 0)))
    inputs += [w2, s1v, b1v, s2v, b2v]
    in_specs += [
        pl.BlockSpec((3, 3, cout, cout), lambda n, t: (0, 0, 0, 0)),
        pl.BlockSpec((1, cout), lambda n, t: (0, 0)),
        pl.BlockSpec((1, cout), lambda n, t: (0, 0)),
        pl.BlockSpec((1, cout), lambda n, t: (0, 0)),
        pl.BlockSpec((1, cout), lambda n, t: (0, 0)),
    ]

    wp = Wo + 2 * LPAD
    scratch_shapes = [pltpu.VMEM((th + 4, wp, cin), f32)]
    if has_skip:
        scratch_shapes.append(pltpu.VMEM((th + 4, wp, cskip), f32))
    scratch_shapes.append(pltpu.VMEM((th + 2, wp, cout), f32))

    # VMEM budget: resident inputs (x2 buffers) + output tile (x2) + scratches
    # + allowance for accumulators; clamped to 64 MiB so it is valid on v7x.
    weight_elems = (w1x.size + (w1s.size if has_skip else 0) + w2.size
                    + 4 * cout)
    est = 4 * (2 * (H * W * cin + (Ho * Wo * cskip if has_skip else 0)
                    + weight_elems)
               + 2 * th * Wo * cout
               + wp * ((th + 4) * (cin + cskip) + (th + 2) * cout)
               + 6 * (th + 2) * Wo * cout)
    vmem_limit = int(min(64 << 20, max(2 * est, 16 << 20)))

    flops = 2 * N * Ho * Wo * 9 * cout * (cin + cskip + cout)
    bytes_accessed = 4 * (x.size + (skip.size if has_skip else 0)
                          + weight_elems + N * Ho * Wo * cout)

    kern = functools.partial(_decoder_block_kernel, has_skip, matmul_dtype)

    out = pl.pallas_call(
        kern,
        out_shape=jax.ShapeDtypeStruct((N, Ho, Wo, cout), f32),
        grid=(N, nt),
        in_specs=in_specs,
        out_specs=pl.BlockSpec((1, th, Wo, cout), lambda n, t: (n, t, 0, 0)),
        scratch_shapes=scratch_shapes,
        compiler_params=pltpu.CompilerParams(
            dimension_semantics=("parallel", "parallel"),
            vmem_limit_bytes=vmem_limit),
        cost_estimate=pl.CostEstimate(flops=int(flops), transcendentals=0,
                                      bytes_accessed=int(bytes_accessed)),
    )(*inputs)

    return jnp.transpose(out, (0, 3, 1, 2))        # NHWC -> NCHW


# ---------------------------------------------------------------------------
# Parameter construction (deterministic, synthetic; BN folded for eval mode)
# ---------------------------------------------------------------------------
def make_conv_bn_params(key, cin, cout, eps=1e-5):
    kw, kg, kb, km, kv = jax.random.split(key, 5)
    w_hwio = 0.1 * jax.random.normal(kw, (3, 3, cin, cout), jnp.float32)
    gamma = 1.0 + 0.05 * jax.random.normal(kg, (cout,), jnp.float32)
    beta = 0.05 * jax.random.normal(kb, (cout,), jnp.float32)
    running_mean = 0.05 * jax.random.normal(km, (cout,), jnp.float32)
    running_var = jnp.abs(1.0 + 0.05 * jax.random.normal(kv, (cout,), jnp.float32))
    scale = gamma / jnp.sqrt(running_var + eps)
    bias = beta - running_mean * scale
    return w_hwio, scale, bias


# ---------------------------------------------------------------------------
# Pure-JAX reference for correctness checking
# ---------------------------------------------------------------------------
def _ref_conv_bn_relu(x_nhwc, w_hwio, scale, bias):
    y = lax.conv_general_dilated(
        x_nhwc, w_hwio, window_strides=(1, 1), padding="SAME",
        dimension_numbers=("NHWC", "HWIO", "NHWC"))
    y = y * scale[None, None, None, :] + bias[None, None, None, :]
    return jnp.maximum(y, 0.0)


def _ref_forward(x_nchw, skip_nchw, params):
    w1, s1, b1 = params["conv1"]
    w2, s2, b2 = params["conv2"]
    x = jnp.transpose(x_nchw, (0, 2, 3, 1))
    x = jnp.repeat(jnp.repeat(x, 2, axis=1), 2, axis=2)
    if skip_nchw is not None:
        skip = jnp.transpose(skip_nchw, (0, 2, 3, 1))
        x = jnp.concatenate([x, skip], axis=-1)
    x = _ref_conv_bn_relu(x, w1, s1, b1)
    x = _ref_conv_bn_relu(x, w2, s2, b2)
    return jnp.transpose(x, (0, 3, 1, 2))


if __name__ == "__main__":
    key = jax.random.PRNGKey(0)

    # --- config 1: with skip, forced row tiling (4 row tiles: top, interior,
    #     bottom) --------------------------------------------------------------
    N, Cin, Cskip, Cout, H, W = 2, 4, 4, 8, 8, 8
    kx, kskip, k1, k2, key = jax.random.split(key, 5)
    x = jax.random.normal(kx, (N, Cin, H, W), jnp.float32)
    skip = jax.random.normal(kskip, (N, Cskip, 2 * H, 2 * W), jnp.float32)
    params = {"conv1": make_conv_bn_params(k1, Cin + Cskip, Cout),
              "conv2": make_conv_bn_params(k2, Cout, Cout)}

    fwd = jax.jit(functools.partial(decoder_block_forward, params=params,
                                    row_tile=4))
    out = jax.block_until_ready(fwd(x, skip))
    ref = jax.block_until_ready(_ref_forward(x, skip, params))
    assert out.shape == (N, Cout, 2 * H, 2 * W), out.shape
    assert jnp.allclose(out, ref, atol=1e-4, rtol=1e-4), \
        float(jnp.max(jnp.abs(out - ref)))

    # --- config 2: no skip connection, auto row tile --------------------------
    N2, Cin2, Cout2, H2, W2 = 1, 6, 16, 4, 4
    kx2, k12, k22, key = jax.random.split(key, 4)
    x2 = jax.random.normal(kx2, (N2, Cin2, H2, W2), jnp.float32)
    params2 = {"conv1": make_conv_bn_params(k12, Cin2, Cout2),
               "conv2": make_conv_bn_params(k22, Cout2, Cout2)}
    fwd2 = jax.jit(functools.partial(decoder_block_forward, skip_nchw=None,
                                     params=params2))
    out2 = jax.block_until_ready(fwd2(x2))
    ref2 = jax.block_until_ready(_ref_forward(x2, None, params2))
    assert out2.shape == (N2, Cout2, 2 * H2, 2 * W2), out2.shape
    assert jnp.allclose(out2, ref2, atol=1e-4, rtol=1e-4), \
        float(jnp.max(jnp.abs(out2 - ref2)))

    print("KERNEL_OK")
</pallas_src>

<mosaic_0001>
module attributes {stable_mosaic.version = 11 : i64} {
  func.func @_decoder_block_kernel(%arg0: i32, %arg1: i32, %arg2: memref<1x8x8x4xf32, #tpu.memory_space<vmem>>, %arg3: memref<1x16x16x4xf32, #tpu.memory_space<vmem>>, %arg4: memref<3x3x4x8xf32, #tpu.memory_space<vmem>>, %arg5: memref<3x3x4x8xf32, #tpu.memory_space<vmem>>, %arg6: memref<3x3x8x8xf32, #tpu.memory_space<vmem>>, %arg7: memref<1x8xf32, #tpu.memory_space<vmem>>, %arg8: memref<1x8xf32, #tpu.memory_space<vmem>>, %arg9: memref<1x8xf32, #tpu.memory_space<vmem>>, %arg10: memref<1x8xf32, #tpu.memory_space<vmem>>, %arg11: memref<1x4x16x8xf32, #tpu.memory_space<vmem>>, %arg12: memref<8x32x4xf32, #tpu.memory_space<vmem>>, %arg13: memref<8x32x4xf32, #tpu.memory_space<vmem>>, %arg14: memref<6x32x8xf32, #tpu.memory_space<vmem>>) attributes {dimension_semantics = [#tpu.dimension_semantics<parallel>, #tpu.dimension_semantics<parallel>], iteration_bounds = array<i64: 2, 4>, scalar_prefetch = 0 : i64, scratch_operands = 3 : i64, tpu.core_type = #tpu.core_type<tc>, window_params = [{transform_indices = @transform_0, window_bounds = array<i64: 1, 8, 8, 4>}, {transform_indices = @transform_1, window_bounds = array<i64: 1, 16, 16, 4>}, {pipeline_mode = #tpu.pipeline_mode<synchronous>, transform_indices = @transform_2, window_bounds = array<i64: 3, 3, 4, 8>}, {pipeline_mode = #tpu.pipeline_mode<synchronous>, transform_indices = @transform_3, window_bounds = array<i64: 3, 3, 4, 8>}, {pipeline_mode = #tpu.pipeline_mode<synchronous>, transform_indices = @transform_4, window_bounds = array<i64: 3, 3, 8, 8>}, {pipeline_mode = #tpu.pipeline_mode<synchronous>, transform_indices = @transform_5, window_bounds = array<i64: 1, 8>}, {pipeline_mode = #tpu.pipeline_mode<synchronous>, transform_indices = @transform_6, window_bounds = array<i64: 1, 8>}, {pipeline_mode = #tpu.pipeline_mode<synchronous>, transform_indices = @transform_7, window_bounds = array<i64: 1, 8>}, {pipeline_mode = #tpu.pipeline_mode<synchronous>, transform_indices = @transform_8, window_bounds = array<i64: 1, 8>}, {transform_indices = @transform_9, window_bounds = array<i64: 1, 4, 16, 8>}]} {
    %c4_i32 = arith.constant 4 : i32
    %0 = arith.muli %arg1, %c4_i32 : i32
    %c0_i32 = arith.constant 0 : i32
    %1 = arith.cmpi eq, %arg1, %c0_i32 : i32
    %cst = arith.constant 0.000000e+00 : f32
    %cst_0 = arith.constant 1.000000e+00 : f32
    %2 = arith.select %1, %cst, %cst_0 : f32
    %c3_i32 = arith.constant 3 : i32
    %3 = arith.cmpi eq, %arg1, %c3_i32 : i32
    %cst_1 = arith.constant 0.000000e+00 : f32
    %cst_2 = arith.constant 1.000000e+00 : f32
    %4 = arith.select %3, %cst_1, %cst_2 : f32
    %c2_i32 = arith.constant 2 : i32
    %5 = arith.muli %arg1, %c2_i32 : i32
    %c0 = arith.constant 0 : index
    %6 = arith.index_cast %5 : i32 to index
    %c0_3 = arith.constant 0 : index
    %c0_4 = arith.constant 0 : index
    %7 = vector.load %arg2[%c0, %6, %c0_3, %c0_4] : memref<1x8x8x4xf32, #tpu.memory_space<vmem>>, vector<1x2x8x4xf32>
    %8 = vector.shape_cast %7 : vector<1x2x8x4xf32> to vector<2x8x4xf32>
    %9 = vector.shape_cast %8 : vector<2x8x4xf32> to vector<2x1x8x4xf32>
    %10 = vector.broadcast %9 : vector<2x1x8x4xf32> to vector<2x2x8x4xf32>
    %11 = vector.shape_cast %10 : vector<2x2x8x4xf32> to vector<4x8x4xf32>
    %12 = vector.shape_cast %11 : vector<4x8x4xf32> to vector<4x8x1x4xf32>
    %13 = vector.broadcast %12 : vector<4x8x1x4xf32> to vector<4x8x2x4xf32>
    %14 = vector.shape_cast %13 : vector<4x8x2x4xf32> to vector<4x16x4xf32>
    %c2 = arith.constant 2 : index
    %c8 = arith.constant 8 : index
    %c0_5 = arith.constant 0 : index
    %15 = vector.load %arg12[%c2, %c8, %c0_5] : memref<8x32x4xf32, #tpu.memory_space<vmem>>, vector<4x16x4xf32>
    tpu.vector_store %arg12[%c2, %c8, %c0_5], %14 {strides = array<i32>} : memref<8x32x4xf32, #tpu.memory_space<vmem>>, vector<4x16x4xf32>,
    %c2_i32_6 = arith.constant 2 : i32
    %16 = arith.muli %arg1, %c2_i32_6 : i32
    %c1_i32 = arith.constant 1 : i32
    %17 = arith.subi %16, %c1_i32 : i32
    %c0_i32_7 = arith.constant 0 : i32
    %18 = arith.maxsi %17, %c0_i32_7 : i32
    %c0_8 = arith.constant 0 : index
    %19 = arith.index_cast %18 : i32 to index
    %c0_9 = arith.constant 0 : index
    %c0_10 = arith.constant 0 : index
    %20 = vector.load %arg2[%c0_8, %19, %c0_9, %c0_10] : memref<1x8x8x4xf32, #tpu.memory_space<vmem>>, vector<1x1x8x4xf32>
    %21 = vector.shape_cast %20 : vector<1x1x8x4xf32> to vector<1x8x4xf32>
    %22 = vector.shape_cast %21 : vector<1x8x4xf32> to vector<1x8x1x4xf32>
    %23 = vector.broadcast %22 : vector<1x8x1x4xf32> to vector<1x8x2x4xf32>
    %24 = vector.shape_cast %23 : vector<1x8x2x4xf32> to vector<1x16x4xf32>
    %25 = vector.shape_cast %24 : vector<1x16x4xf32> to vector<1x16x4xf32>
    %26 = vector.broadcast %25 : vector<1x16x4xf32> to vector<2x16x4xf32>
    %27 = vector.broadcast %2 : f32 to vector<2x16x4xf32>
    %28 = arith.mulf %27, %26 : vector<2x16x4xf32>
    %c0_11 = arith.constant 0 : index
    %c8_12 = arith.constant 8 : index
    %c0_13 = arith.constant 0 : index
    %29 = vector.load %arg12[%c0_11, %c8_12, %c0_13] : memref<8x32x4xf32, #tpu.memory_space<vmem>>, vector<2x16x4xf32>
    tpu.vector_store %arg12[%c0_11, %c8_12, %c0_13], %28 {strides = array<i32>} : memref<8x32x4xf32, #tpu.memory_space<vmem>>, vector<2x16x4xf32>,
    %c1_i32_14 = arith.constant 1 : i32
    %30 = arith.addi %arg1, %c1_i32_14 : i32
    %c2_i32_15 = arith.constant 2 : i32
    %31 = arith.muli %30, %c2_i32_15 : i32
    %c7_i32 = arith.constant 7 : i32
    %32 = arith.minsi %31, %c7_i32 : i32
    %c0_16 = arith.constant 0 : index
    %33 = arith.index_cast %32 : i32 to index
    %c0_17 = arith.constant 0 : index
    %c0_18 = arith.constant 0 : index
    %34 = vector.load %arg2[%c0_16, %33, %c0_17, %c0_18] : memref<1x8x8x4xf32, #tpu.memory_space<vmem>>, vector<1x1x8x4xf32>
    %35 = vector.shape_cast %34 : vector<1x1x8x4xf32> to vector<1x8x4xf32>
    %36 = vector.shape_cast %35 : vector<1x8x4xf32> to vector<1x8x1x4xf32>
    %37 = vector.broadcast %36 : vector<1x8x1x4xf32> to vector<1x8x2x4xf32>
    %38 = vector.shape_cast %37 : vector<1x8x2x4xf32> to vector<1x16x4xf32>
    %39 = vector.shape_cast %38 : vector<1x16x4xf32> to vector<1x16x4xf32>
    %40 = vector.broadcast %39 : vector<1x16x4xf32> to vector<2x16x4xf32>
    %41 = vector.broadcast %4 : f32 to vector<2x16x4xf32>
    %42 = arith.mulf %41, %40 : vector<2x16x4xf32>
    %c6 = arith.constant 6 : index
    %c8_19 = arith.constant 8 : index
    %c0_20 = arith.constant 0 : index
    %43 = vector.load %arg12[%c6, %c8_19, %c0_20] : memref<8x32x4xf32, #tpu.memory_space<vmem>>, vector<2x16x4xf32>
    tpu.vector_store %arg12[%c6, %c8_19, %c0_20], %42 {strides = array<i32>} : memref<8x32x4xf32, #tpu.memory_space<vmem>>, vector<2x16x4xf32>,
    %cst_21 = arith.constant 0.000000e+00 : f32
    %44 = vector.broadcast %cst_21 : f32 to vector<8x1x4xf32>
    %c0_22 = arith.constant 0 : index
    %c7 = arith.constant 7 : index
    %c0_23 = arith.constant 0 : index
    %45 = vector.load %arg12[%c0_22, %c7, %c0_23] : memref<8x32x4xf32, #tpu.memory_space<vmem>>, vector<8x1x4xf32>
    tpu.vector_store %arg12[%c0_22, %c7, %c0_23], %44 {strides = array<i32>} : memref<8x32x4xf32, #tpu.memory_space<vmem>>, vector<8x1x4xf32>,
    %cst_24 = arith.constant 0.000000e+00 : f32
    %46 = vector.broadcast %cst_24 : f32 to vector<8x1x4xf32>
    %c0_25 = arith.constant 0 : index
    %c24 = arith.constant 24 : index
    %c0_26 = arith.constant 0 : index
    %47 = vector.load %arg12[%c0_25, %c24, %c0_26] : memref<8x32x4xf32, #tpu.memory_space<vmem>>, vector<8x1x4xf32>
    tpu.vector_store %arg12[%c0_25, %c24, %c0_26], %46 {strides = array<i32>} : memref<8x32x4xf32, #tpu.memory_space<vmem>>, vector<8x1x4xf32>,
    %c0_27 = arith.constant 0 : index
    %48 = arith.index_cast %0 : i32 to index
    %c0_28 = arith.constant 0 : index
    %c0_29 = arith.constant 0 : index
    %49 = vector.load %arg3[%c0_27, %48, %c0_28, %c0_29] : memref<1x16x16x4xf32, #tpu.memory_space<vmem>>, vector<1x4x16x4xf32>
    %50 = vector.shape_cast %49 : vector<1x4x16x4xf32> to vector<4x16x4xf32>
    %c2_30 = arith.constant 2 : index
    %c8_31 = arith.constant 8 : index
    %c0_32 = arith.constant 0 : index
    %51 = vector.load %arg13[%c2_30, %c8_31, %c0_32] : memref<8x32x4xf32, #tpu.memory_space<vmem>>, vector<4x16x4xf32>
    tpu.vector_store %arg13[%c2_30, %c8_31, %c0_32], %50 {strides = array<i32>} : memref<8x32x4xf32, #tpu.memory_space<vmem>>, vector<4x16x4xf32>,
    %c2_i32_33 = arith.constant 2 : i32
    %52 = arith.subi %0, %c2_i32_33 : i32
    %c0_i32_34 = arith.constant 0 : i32
    %53 = arith.maxsi %52, %c0_i32_34 : i32
    %c0_35 = arith.constant 0 : index
    %54 = arith.index_cast %53 : i32 to index
    %c0_36 = arith.constant 0 : index
    %c0_37 = arith.constant 0 : index
    %55 = vector.load %arg3[%c0_35, %54, %c0_36, %c0_37] : memref<1x16x16x4xf32, #tpu.memory_space<vmem>>, vector<1x2x16x4xf32>
    %56 = vector.shape_cast %55 : vector<1x2x16x4xf32> to vector<2x16x4xf32>
    %57 = vector.broadcast %2 : f32 to vector<2x16x4xf32>
    %58 = arith.mulf %57, %56 : vector<2x16x4xf32>
    %c0_38 = arith.constant 0 : index
    %c8_39 = arith.constant 8 : index
    %c0_40 = arith.constant 0 : index
    %59 = vector.load %arg13[%c0_38, %c8_39, %c0_40] : memref<8x32x4xf32, #tpu.memory_space<vmem>>, vector<2x16x4xf32>
    tpu.vector_store %arg13[%c0_38, %c8_39, %c0_40], %58 {strides = array<i32>} : memref<8x32x4xf32, #tpu.memory_space<vmem>>, vector<2x16x4xf32>,
    %c4_i32_41 = arith.constant 4 : i32
    %60 = arith.addi %0, %c4_i32_41 : i32
    %c14_i32 = arith.constant 14 : i32
    %61 = arith.minsi %60, %c14_i32 : i32
    %c0_42 = arith.constant 0 : index
    %62 = arith.index_cast %61 : i32 to index
    %c0_43 = arith.constant 0 : index
    %c0_44 = arith.constant 0 : index
    %63 = vector.load %arg3[%c0_42, %62, %c0_43, %c0_44] : memref<1x16x16x4xf32, #tpu.memory_space<vmem>>, vector<1x2x16x4xf32>
    %64 = vector.shape_cast %63 : vector<1x2x16x4xf32> to vector<2x16x4xf32>
    %65 = vector.broadcast %4 : f32 to vector<2x16x4xf32>
    %66 = arith.mulf %65, %64 : vector<2x16x4xf32>
    %c6_45 = arith.constant 6 : index
    %c8_46 = arith.constant 8 : index
    %c0_47 = arith.constant 0 : index
    %67 = vector.load %arg13[%c6_45, %c8_46, %c0_47] : memref<8x32x4xf32, #tpu.memory_space<vmem>>, vector<2x16x4xf32>
    tpu.vector_store %arg13[%c6_45, %c8_46, %c0_47], %66 {strides = array<i32>} : memref<8x32x4xf32, #tpu.memory_space<vmem>>, vector<2x16x4xf32>,
    %cst_48 = arith.constant 0.000000e+00 : f32
    %68 = vector.broadcast %cst_48 : f32 to vector<8x1x4xf32>
    %c0_49 = arith.constant 0 : index
    %c7_50 = arith.constant 7 : index
    %c0_51 = arith.constant 0 : index
    %69 = vector.load %arg13[%c0_49, %c7_50, %c0_51] : memref<8x32x4xf32, #tpu.memory_space<vmem>>, vector<8x1x4xf32>
    tpu.vector_store %arg13[%c0_49, %c7_50, %c0_51], %68 {strides = array<i32>} : memref<8x32x4xf32, #tpu.memory_space<vmem>>, vector<8x1x4xf32>,
    %cst_52 = arith.constant 0.000000e+00 : f32
    %70 = vector.broadcast %cst_52 : f32 to vector<8x1x4xf32>
    %c0_53 = arith.constant 0 : index
    %c24_54 = arith.constant 24 : index
    %c0_55 = arith.constant 0 : index
    %71 = vector.load %arg13[%c0_53, %c24_54, %c0_55] : memref<8x32x4xf32, #tpu.memory_space<vmem>>, vector<8x1x4xf32>
    tpu.vector_store %arg13[%c0_53, %c24_54, %c0_55], %70 {strides = array<i32>} : memref<8x32x4xf32, #tpu.memory_space<vmem>>, vector<8x1x4xf32>,
    %cst_56 = arith.constant 0.000000e+00 : f32
    %72 = vector.broadcast %cst_56 : f32 to vector<96x8xf32>
    %c0_57 = arith.constant 0 : index
    %c7_58 = arith.constant 7 : index
    %c0_59 = arith.constant 0 : index
    %73 = vector.load %arg12[%c0_57, %c7_58, %c0_59] : memref<8x32x4xf32, #tpu.memory_space<vmem>>, vector<6x16x4xf32>
    %74 = vector.shape_cast %73 : vector<6x16x4xf32> to vector<96x4xf32>
    %c0_60 = arith.constant 0 : index
    %c0_61 = arith.constant 0 : index
    %c0_62 = arith.constant 0 : index
    %c0_63 = arith.constant 0 : index
    %75 = vector.load %arg4[%c0_60, %c0_61, %c0_62, %c0_63] : memref<3x3x4x8xf32, #tpu.memory_space<vmem>>, vector<1x1x4x8xf32>
    %76 = vector.shape_cast %75 : vector<1x1x4x8xf32> to vector<4x8xf32>
    %cst_64 = arith.constant dense<0.000000e+00> : vector<96x8xf32>
    %77 = tpu.matmul %74, %76, %cst_64 {dimension_numbers = #tpu.dot_dimension_numbers<[1], [0], [0], [1], [0, 0, 1, 1], [], []>} : vector<96x4xf32>, vector<4x8xf32>, vector<96x8xf32> -> vector<96x8xf32>
    %78 = arith.addf %72, %77 : vector<96x8xf32>
    %c0_65 = arith.constant 0 : index
    %c8_66 = arith.constant 8 : index
    %c0_67 = arith.constant 0 : index
    %79 = vector.load %arg12[%c0_65, %c8_66, %c0_67] : memref<8x32x4xf32, #tpu.memory_space<vmem>>, vector<6x16x4xf32>
    %80 = vector.shape_cast %79 : vector<6x16x4xf32> to vector<96x4xf32>
    %c0_68 = arith.constant 0 : index
    %c1 = arith.constant 1 : index
    %c0_69 = arith.constant 0 : index
    %c0_70 = arith.constant 0 : index
    %81 = vector.load %arg4[%c0_68, %c1, %c0_69, %c0_70] : memref<3x3x4x8xf32, #tpu.memory_space<vmem>>, vector<1x1x4x8xf32>
    %82 = vector.shape_cast %81 : vector<1x1x4x8xf32> to vector<4x8xf32>
    %cst_71 = arith.constant dense<0.000000e+00> : vector<96x8xf32>
    %83 = tpu.matmul %80, %82, %cst_71 {dimension_numbers = #tpu.dot_dimension_numbers<[1], [0], [0], [1], [0, 0, 1, 1], [], []>} : vector<96x4xf32>, vector<4x8xf32>, vector<96x8xf32> -> vector<96x8xf32>
    %84 = arith.addf %78, %83 : vector<96x8xf32>
    %c0_72 = arith.constant 0 : index
    %c9 = arith.constant 9 : index
    %c0_73 = arith.constant 0 : index
    %85 = vector.load %arg12[%c0_72, %c9, %c0_73] : memref<8x32x4xf32, #tpu.memory_space<vmem>>, vector<6x16x4xf32>
    %86 = vector.shape_cast %85 : vector<6x16x4xf32> to vector<96x4xf32>
    %c0_74 = arith.constant 0 : index
    %c2_75 = arith.constant 2 : index
    %c0_76 = arith.constant 0 : index
    %c0_77 = arith.constant 0 : index
    %87 = vector.load %arg4[%c0_74, %c2_75, %c0_76, %c0_77] : memref<3x3x4x8xf32, #tpu.memory_space<vmem>>, vector<1x1x4x8xf32>
    %88 = vector.shape_cast %87 : vector<1x1x4x8xf32> to vector<4x8xf32>
    %cst_78 = arith.constant dense<0.000000e+00> : vector<96x8xf32>
    %89 = tpu.matmul %86, %88, %cst_78 {dimension_numbers = #tpu.dot_dimension_numbers<[1], [0], [0], [1], [0, 0, 1, 1], [], []>} : vector<96x4xf32>, vector<4x8xf32>, vector<96x8xf32> -> vector<96x8xf32>
    %90 = arith.addf %84, %89 : vector<96x8xf32>
    %c1_79 = arith.constant 1 : index
    %c7_80 = arith.constant 7 : index
    %c0_81 = arith.constant 0 : index
    %91 = vector.load %arg12[%c1_79, %c7_80, %c0_81] : memref<8x32x4xf32, #tpu.memory_space<vmem>>, vector<6x16x4xf32>
    %92 = vector.shape_cast %91 : vector<6x16x4xf32> to vector<96x4xf32>
    %c1_82 = arith.constant 1 : index
    %c0_83 = arith.constant 0 : index
    %c0_84 = arith.constant 0 : index
    %c0_85 = arith.constant 0 : index
    %93 = vector.load %arg4[%c1_82, %c0_83, %c0_84, %c0_85] : memref<3x3x4x8xf32, #tpu.memory_space<vmem>>, vector<1x1x4x8xf32>
    %94 = vector.shape_cast %93 : vector<1x1x4x8xf32> to vector<4x8xf32>
    %cst_86 = arith.constant dense<0.000000e+00> : vector<96x8xf32>
    %95 = tpu.matmul %92, %94, %cst_86 {dimension_numbers = #tpu.dot_dimension_numbers<[1], [0], [0], [1], [0, 0, 1, 1], [], []>} : vector<96x4xf32>, vector<4x8xf32>, vector<96x8xf32> -> vector<96x8xf32>
    %96 = arith.addf %90, %95 : vector<96x8xf32>
    %c1_87 = arith.constant 1 : index
    %c8_88 = arith.constant 8 : index
    %c0_89 = arith.constant 0 : index
    %97 = vector.load %arg12[%c1_87, %c8_88, %c0_89] : memref<8x32x4xf32, #tpu.memory_space<vmem>>, vector<6x16x4xf32>
    %98 = vector.shape_cast %97 : vector<6x16x4xf32> to vector<96x4xf32>
    %c1_90 = arith.constant 1 : index
    %c1_91 = arith.constant 1 : index
    %c0_92 = arith.constant 0 : index
    %c0_93 = arith.constant 0 : index
    %99 = vector.load %arg4[%c1_90, %c1_91, %c0_92, %c0_93] : memref<3x3x4x8xf32, #tpu.memory_space<vmem>>, vector<1x1x4x8xf32>
    %100 = vector.shape_cast %99 : vector<1x1x4x8xf32> to vector<4x8xf32>
    %cst_94 = arith.constant dense<0.000000e+00> : vector<96x8xf32>
    %101 = tpu.matmul %98, %100, %cst_94 {dimension_numbers = #tpu.dot_dimension_numbers<[1], [0], [0], [1], [0, 0, 1, 1], [], []>} : vector<96x4xf32>, vector<4x8xf32>, vector<96x8xf32> -> vector<96x8xf32>
    %102 = arith.addf %96, %101 : vector<96x8xf32>
    %c1_95 = arith.constant 1 : index
    %c9_96 = arith.constant 9 : index
    %c0_97 = arith.constant 0 : index
    %103 = vector.load %arg12[%c1_95, %c9_96, %c0_97] : memref<8x32x4xf32, #tpu.memory_space<vmem>>, vector<6x16x4xf32>
    %104 = vector.shape_cast %103 : vector<6x16x4xf32> to vector<96x4xf32>
    %c1_98 = arith.constant 1 : index
    %c2_99 = arith.constant 2 : index
    %c0_100 = arith.constant 0 : index
    %c0_101 = arith.constant 0 : index
    %105 = vector.load %arg4[%c1_98, %c2_99, %c0_100, %c0_101] : memref<3x3x4x8xf32, #tpu.memory_space<vmem>>, vector<1x1x4x8xf32>
    %106 = vector.shape_cast %105 : vector<1x1x4x8xf32> to vector<4x8xf32>
    %cst_102 = arith.constant dense<0.000000e+00> : vector<96x8xf32>
    %107 = tpu.matmul %104, %106, %cst_102 {dimension_numbers = #tpu.dot_dimension_numbers<[1], [0], [0], [1], [0, 0, 1, 1], [], []>} : vector<96x4xf32>, vector<4x8xf32>, vector<96x8xf32> -> vector<96x8xf32>
    %108 = arith.addf %102, %107 : vector<96x8xf32>
    %c2_103 = arith.constant 2 : index
    %c7_104 = arith.constant 7 : index
    %c0_105 = arith.constant 0 : index
    %109 = vector.load %arg12[%c2_103, %c7_104, %c0_105] : memref<8x32x4xf32, #tpu.memory_space<vmem>>, vector<6x16x4xf32>
    %110 = vector.shape_cast %109 : vector<6x16x4xf32> to vector<96x4xf32>
    %c2_106 = arith.constant 2 : index
    %c0_107 = arith.constant 0 : index
    %c0_108 = arith.constant 0 : index
    %c0_109 = arith.constant 0 : index
    %111 = vector.load %arg4[%c2_106, %c0_107, %c0_108, %c0_109] : memref<3x3x4x8xf32, #tpu.memory_space<vmem>>, vector<1x1x4x8xf32>
    %112 = vector.shape_cast %111 : vector<1x1x4x8xf32> to vector<4x8xf32>
    %cst_110 = arith.constant dense<0.000000e+00> : vector<96x8xf32>
    %113 = tpu.matmul %110, %112, %cst_110 {dimension_numbers = #tpu.dot_dimension_numbers<[1], [0], [0], [1], [0, 0, 1, 1], [], []>} : vector<96x4xf32>, vector<4x8xf32>, vector<96x8xf32> -> vector<96x8xf32>
    %114 = arith.addf %108, %113 : vector<96x8xf32>
    %c2_111 = arith.constant 2 : index
    %c8_112 = arith.constant 8 : index
    %c0_113 = arith.constant 0 : index
    %115 = vector.load %arg12[%c2_111, %c8_112, %c0_113] : memref<8x32x4xf32, #tpu.memory_space<vmem>>, vector<6x16x4xf32>
    %116 = vector.shape_cast %115 : vector<6x16x4xf32> to vector<96x4xf32>
    %c2_114 = arith.constant 2 : index
    %c1_115 = arith.constant 1 : index
    %c0_116 = arith.constant 0 : index
    %c0_117 = arith.constant 0 : index
    %117 = vector.load %arg4[%c2_114, %c1_115, %c0_116, %c0_117] : memref<3x3x4x8xf32, #tpu.memory_space<vmem>>, vector<1x1x4x8xf32>
    %118 = vector.shape_cast %117 : vector<1x1x4x8xf32> to vector<4x8xf32>
    %cst_118 = arith.constant dense<0.000000e+00> : vector<96x8xf32>
    %119 = tpu.matmul %116, %118, %cst_118 {dimension_numbers = #tpu.dot_dimension_numbers<[1], [0], [0], [1], [0, 0, 1, 1], [], []>} : vector<96x4xf32>, vector<4x8xf32>, vector<96x8xf32> -> vector<96x8xf32>
    %120 = arith.addf %114, %119 : vector<96x8xf32>
    %c2_119 = arith.constant 2 : index
    %c9_120 = arith.constant 9 : index
    %c0_121 = arith.constant 0 : index
    %121 = vector.load %arg12[%c2_119, %c9_120, %c0_121] : memref<8x32x4xf32, #tpu.memory_space<vmem>>, vector<6x16x4xf32>
    %122 = vector.shape_cast %121 : vector<6x16x4xf32> to vector<96x4xf32>
    %c2_122 = arith.constant 2 : index
    %c2_123 = arith.constant 2 : index
    %c0_124 = arith.constant 0 : index
    %c0_125 = arith.constant 0 : index
    %123 = vector.load %arg4[%c2_122, %c2_123, %c0_124, %c0_125] : memref<3x3x4x8xf32, #tpu.memory_space<vmem>>, vector<1x1x4x8xf32>
    %124 = vector.shape_cast %123 : vector<1x1x4x8xf32> to vector<4x8xf32>
    %cst_126 = arith.constant dense<0.000000e+00> : vector<96x8xf32>
    %125 = tpu.matmul %122, %124, %cst_126 {dimension_numbers = #tpu.dot_dimension_numbers<[1], [0], [0], [1], [0, 0, 1, 1], [], []>} : vector<96x4xf32>, vector<4x8xf32>, vector<96x8xf32> -> vector<96x8xf32>
    %126 = arith.addf %120, %125 : vector<96x8xf32>
    %c0_127 = arith.constant 0 : index
    %c7_128 = arith.constant 7 : index
    %c0_129 = arith.constant 0 : index
    %127 = vector.load %arg13[%c0_127, %c7_128, %c0_129] : memref<8x32x4xf32, #tpu.memory_space<vmem>>, vector<6x16x4xf32>
    %128 = vector.shape_cast %127 : vector<6x16x4xf32> to vector<96x4xf32>
    %c0_130 = arith.constant 0 : index
    %c0_131 = arith.constant 0 : index
    %c0_132 = arith.constant 0 : index
    %c0_133 = arith.constant 0 : index
    %129 = vector.load %arg5[%c0_130, %c0_131, %c0_132, %c0_133] : memref<3x3x4x8xf32, #tpu.memory_space<vmem>>, vector<1x1x4x8xf32>
    %130 = vector.shape_cast %129 : vector<1x1x4x8xf32> to vector<4x8xf32>
    %cst_134 = arith.constant dense<0.000000e+00> : vector<96x8xf32>
    %131 = tpu.matmul %128, %130, %cst_134 {dimension_numbers = #tpu.dot_dimension_numbers<[1], [0], [0], [1], [0, 0, 1, 1], [], []>} : vector<96x4xf32>, vector<4x8xf32>, vector<96x8xf32> -> vector<96x8xf32>
    %132 = arith.addf %126, %131 : vector<96x8xf32>
    %c0_135 = arith.constant 0 : index
    %c8_136 = arith.constant 8 : index
    %c0_137 = arith.constant 0 : index
    %133 = vector.load %arg13[%c0_135, %c8_136, %c0_137] : memref<8x32x4xf32, #tpu.memory_space<vmem>>, vector<6x16x4xf32>
    %134 = vector.shape_cast %133 : vector<6x16x4xf32> to vector<96x4xf32>
    %c0_138 = arith.constant 0 : index
    %c1_139 = arith.constant 1 : index
    %c0_140 = arith.constant 0 : index
    %c0_141 = arith.constant 0 : index
    %135 = vector.load %arg5[%c0_138, %c1_139, %c0_140, %c0_141] : memref<3x3x4x8xf32, #tpu.memory_space<vmem>>, vector<1x1x4x8xf32>
    %136 = vector.shape_cast %135 : vector<1x1x4x8xf32> to vector<4x8xf32>
    %cst_142 = arith.constant dense<0.000000e+00> : vector<96x8xf32>
    %137 = tpu.matmul %134, %136, %cst_142 {dimension_numbers = #tpu.dot_dimension_numbers<[1], [0], [0], [1], [0, 0, 1, 1], [], []>} : vector<96x4xf32>, vector<4x8xf32>, vector<96x8xf32> -> vector<96x8xf32>
    %138 = arith.addf %132, %137 : vector<96x8xf32>
    %c0_143 = arith.constant 0 : index
    %c9_144 = arith.constant 9 : index
    %c0_145 = arith.constant 0 : index
    %139 = vector.load %arg13[%c0_143, %c9_144, %c0_145] : memref<8x32x4xf32, #tpu.memory_space<vmem>>, vector<6x16x4xf32>
    %140 = vector.shape_cast %139 : vector<6x16x4xf32> to vector<96x4xf32>
    %c0_146 = arith.constant 0 : index
    %c2_147 = arith.constant 2 : index
    %c0_148 = arith.constant 0 : index
    %c0_149 = arith.constant 0 : index
    %141 = vector.load %arg5[%c0_146, %c2_147, %c0_148, %c0_149] : memref<3x3x4x8xf32, #tpu.memory_space<vmem>>, vector<1x1x4x8xf32>
    %142 = vector.shape_cast %141 : vector<1x1x4x8xf32> to vector<4x8xf32>
    %cst_150 = arith.constant dense<0.000000e+00> : vector<96x8xf32>
    %143 = tpu.matmul %140, %142, %cst_150 {dimension_numbers = #tpu.dot_dimension_numbers<[1], [0], [0], [1], [0, 0, 1, 1], [], []>} : vector<96x4xf32>, vector<4x8xf32>, vector<96x8xf32> -> vector<96x8xf32>
    %144 = arith.addf %138, %143 : vector<96x8xf32>
    %c1_151 = arith.constant 1 : index
    %c7_152 = arith.constant 7 : index
    %c0_153 = arith.constant 0 : index
    %145 = vector.load %arg13[%c1_151, %c7_152, %c0_153] : memref<8x32x4xf32, #tpu.memory_space<vmem>>, vector<6x16x4xf32>
    %146 = vector.shape_cast %145 : vector<6x16x4xf32> to vector<96x4xf32>
    %c1_154 = arith.constant 1 : index
    %c0_155 = arith.constant 0 : index
    %c0_156 = arith.constant 0 : index
    %c0_157 = arith.constant 0 : index
    %147 = vector.load %arg5[%c1_154, %c0_155, %c0_156, %c0_157] : memref<3x3x4x8xf32, #tpu.memory_space<vmem>>, vector<1x1x4x8xf32>
    %148 = vector.shape_cast %147 : vector<1x1x4x8xf32> to vector<4x8xf32>
    %cst_158 = arith.constant dense<0.000000e+00> : vector<96x8xf32>
    %149 = tpu.matmul %146, %148, %cst_158 {dimension_numbers = #tpu.dot_dimension_numbers<[1], [0], [0], [1], [0, 0, 1, 1], [], []>} : vector<96x4xf32>, vector<4x8xf32>, vector<96x8xf32> -> vector<96x8xf32>
    %150 = arith.addf %144, %149 : vector<96x8xf32>
    %c1_159 = arith.constant 1 : index
    %c8_160 = arith.constant 8 : index
    %c0_161 = arith.constant 0 : index
    %151 = vector.load %arg13[%c1_159, %c8_160, %c0_161] : memref<8x32x4xf32, #tpu.memory_space<vmem>>, vector<6x16x4xf32>
    %152 = vector.shape_cast %151 : vector<6x16x4xf32> to vector<96x4xf32>
    %c1_162 = arith.constant 1 : index
    %c1_163 = arith.constant 1 : index
    %c0_164 = arith.constant 0 : index
    %c0_165 = arith.constant 0 : index
    %153 = vector.load %arg5[%c1_162, %c1_163, %c0_164, %c0_165] : memref<3x3x4x8xf32, #tpu.memory_space<vmem>>, vector<1x1x4x8xf32>
    %154 = vector.shape_cast %153 : vector<1x1x4x8xf32> to vector<4x8xf32>
    %cst_166 = arith.constant dense<0.000000e+00> : vector<96x8xf32>
    %155 = tpu.matmul %152, %154, %cst_166 {dimension_numbers = #tpu.dot_dimension_numbers<[1], [0], [0], [1], [0, 0, 1, 1], [], []>} : vector<96x4xf32>, vector<4x8xf32>, vector<96x8xf32> -> vector<96x8xf32>
    %156 = arith.addf %150, %155 : vector<96x8xf32>
    %c1_167 = arith.constant 1 : index
    %c9_168 = arith.constant 9 : index
    %c0_169 = arith.constant 0 : index
    %157 = vector.load %arg13[%c1_167, %c9_168, %c0_169] : memref<8x32x4xf32, #tpu.memory_space<vmem>>, vector<6x16x4xf32>
    %158 = vector.shape_cast %157 : vector<6x16x4xf32> to vector<96x4xf32>
    %c1_170 = arith.constant 1 : index
    %c2_171 = arith.constant 2 : index
    %c0_172 = arith.constant 0 : index
    %c0_173 = arith.constant 0 : index
    %159 = vector.load %arg5[%c1_170, %c2_171, %c0_172, %c0_173] : memref<3x3x4x8xf32, #tpu.memory_space<vmem>>, vector<1x1x4x8xf32>
    %160 = vector.shape_cast %159 : vector<1x1x4x8xf32> to vector<4x8xf32>
    %cst_174 = arith.constant dense<0.000000e+00> : vector<96x8xf32>
    %161 = tpu.matmul %158, %160, %cst_174 {dimension_numbers = #tpu.dot_dimension_numbers<[1], [0], [0], [1], [0, 0, 1, 1], [], []>} : vector<96x4xf32>, vector<4x8xf32>, vector<96x8xf32> -> vector<96x8xf32>
    %162 = arith.addf %156, %161 : vector<96x8xf32>
    %c2_175 = arith.constant 2 : index
    %c7_176 = arith.constant 7 : index
    %c0_177 = arith.constant 0 : index
    %163 = vector.load %arg13[%c2_175, %c7_176, %c0_177] : memref<8x32x4xf32, #tpu.memory_space<vmem>>, vector<6x16x4xf32>
    %164 = vector.shape_cast %163 : vector<6x16x4xf32> to vector<96x4xf32>
    %c2_178 = arith.constant 2 : index
    %c0_179 = arith.constant 0 : index
    %c0_180 = arith.constant 0 : index
    %c0_181 = arith.constant 0 : index
    %165 = vector.load %arg5[%c2_178, %c0_179, %c0_180, %c0_181] : memref<3x3x4x8xf32, #tpu.memory_space<vmem>>, vector<1x1x4x8xf32>
    %166 = vector.shape_cast %165 : vector<1x1x4x8xf32> to vector<4x8xf32>
    %cst_182 = arith.constant dense<0.000000e+00> : vector<96x8xf32>
    %167 = tpu.matmul %164, %166, %cst_182 {dimension_numbers = #tpu.dot_dimension_numbers<[1], [0], [0], [1], [0, 0, 1, 1], [], []>} : vector<96x4xf32>, vector<4x8xf32>, vector<96x8xf32> -> vector<96x8xf32>
    %168 = arith.addf %162, %167 : vector<96x8xf32>
    %c2_183 = arith.constant 2 : index
    %c8_184 = arith.constant 8 : index
    %c0_185 = arith.constant 0 : index
    %169 = vector.load %arg13[%c2_183, %c8_184, %c0_185] : memref<8x32x4xf32, #tpu.memory_space<vmem>>, vector<6x16x4xf32>
    %170 = vector.shape_cast %169 : vector<6x16x4xf32> to vector<96x4xf32>
    %c2_186 = arith.constant 2 : index
    %c1_187 = arith.constant 1 : index
    %c0_188 = arith.constant 0 : index
    %c0_189 = arith.constant 0 : index
    %171 = vector.load %arg5[%c2_186, %c1_187, %c0_188, %c0_189] : memref<3x3x4x8xf32, #tpu.memory_space<vmem>>, vector<1x1x4x8xf32>
    %172 = vector.shape_cast %171 : vector<1x1x4x8xf32> to vector<4x8xf32>
    %cst_190 = arith.constant dense<0.000000e+00> : vector<96x8xf32>
    %173 = tpu.matmul %170, %172, %cst_190 {dimension_numbers = #tpu.dot_dimension_numbers<[1], [0], [0], [1], [0, 0, 1, 1], [], []>} : vector<96x4xf32>, vector<4x8xf32>, vector<96x8xf32> -> vector<96x8xf32>
    %174 = arith.addf %168, %173 : vector<96x8xf32>
    %c2_191 = arith.constant 2 : index
    %c9_192 = arith.constant 9 : index
    %c0_193 = arith.constant 0 : index
    %175 = vector.load %arg13[%c2_191, %c9_192, %c0_193] : memref<8x32x4xf32, #tpu.memory_space<vmem>>, vector<6x16x4xf32>
    %176 = vector.shape_cast %175 : vector<6x16x4xf32> to vector<96x4xf32>
    %c2_194 = arith.constant 2 : index
    %c2_195 = arith.constant 2 : index
    %c0_196 = arith.constant 0 : index
    %c0_197 = arith.constant 0 : index
    %177 = vector.load %arg5[%c2_194, %c2_195, %c0_196, %c0_197] : memref<3x3x4x8xf32, #tpu.memory_space<vmem>>, vector<1x1x4x8xf32>
    %178 = vector.shape_cast %177 : vector<1x1x4x8xf32> to vector<4x8xf32>
    %cst_198 = arith.constant dense<0.000000e+00> : vector<96x8xf32>
    %179 = tpu.matmul %176, %178, %cst_198 {dimension_numbers = #tpu.dot_dimension_numbers<[1], [0], [0], [1], [0, 0, 1, 1], [], []>} : vector<96x4xf32>, vector<4x8xf32>, vector<96x8xf32> -> vector<96x8xf32>
    %180 = arith.addf %174, %179 : vector<96x8xf32>
    %c0_199 = arith.constant 0 : index
    %c0_200 = arith.constant 0 : index
    %181 = vector.load %arg7[%c0_199, %c0_200] : memref<1x8xf32, #tpu.memory_space<vmem>>, vector<1x8xf32>
    %182 = vector.broadcast %181 : vector<1x8xf32> to vector<96x8xf32>
    %183 = arith.mulf %180, %182 : vector<96x8xf32>
    %c0_201 = arith.constant 0 : index
    %c0_202 = arith.constant 0 : index
    %184 = vector.load %arg8[%c0_201, %c0_202] : memref<1x8xf32, #tpu.memory_space<vmem>>, vector<1x8xf32>
    %185 = vector.broadcast %184 : vector<1x8xf32> to vector<96x8xf32>
    %186 = arith.addf %183, %185 : vector<96x8xf32>
    %cst_203 = arith.constant 0.000000e+00 : f32
    %187 = vector.broadcast %cst_203 : f32 to vector<96x8xf32>
    %188 = arith.maximumf %186, %187 : vector<96x8xf32>
    %189 = vector.shape_cast %188 : vector<96x8xf32> to vector<6x16x8xf32>
    %c0_204 = arith.constant 0 : index
    %c8_205 = arith.constant 8 : index
    %c0_206 = arith.constant 0 : index
    %190 = vector.load %arg14[%c0_204, %c8_205, %c0_206] : memref<6x32x8xf32, #tpu.memory_space<vmem>>, vector<6x16x8xf32>
    tpu.vector_store %arg14[%c0_204, %c8_205, %c0_206], %189 {strides = array<i32>} : memref<6x32x8xf32, #tpu.memory_space<vmem>>, vector<6x16x8xf32>,
    %cst_207 = arith.constant 0.000000e+00 : f32
    %191 = vector.broadcast %cst_207 : f32 to vector<1x16x8xf32>
    %c0_i32_208 = arith.constant 0 : i32
    %192 = arith.cmpi eq, %arg1, %c0_i32_208 : i32
    %193 = arith.extui %192 : i1 to i32
    %c0_i32_209 = arith.constant 0 : i32
    %194 = arith.cmpi ne, %193, %c0_i32_209 : i32
    scf.if %194 {
      %c0_302 = arith.constant 0 : index
      %c8_303 = arith.constant 8 : index
      %c0_304 = arith.constant 0 : index
      %269 = vector.load %arg14[%c0_302, %c8_303, %c0_304] : memref<6x32x8xf32, #tpu.memory_space<vmem>>, vector<1x16x8xf32>
      tpu.vector_store %arg14[%c0_302, %c8_303, %c0_304], %191 {strides = array<i32>} : memref<6x32x8xf32, #tpu.memory_space<vmem>>, vector<1x16x8xf32>,
    } else {
    }
    %c3_i32_210 = arith.constant 3 : i32
    %195 = arith.cmpi eq, %arg1, %c3_i32_210 : i32
    %196 = arith.extui %195 : i1 to i32
    %c0_i32_211 = arith.constant 0 : i32
    %197 = arith.cmpi ne, %196, %c0_i32_211 : i32
    scf.if %197 {
      %c5 = arith.constant 5 : index
      %c8_302 = arith.constant 8 : index
      %c0_303 = arith.constant 0 : index
      %269 = vector.load %arg14[%c5, %c8_302, %c0_303] : memref<6x32x8xf32, #tpu.memory_space<vmem>>, vector<1x16x8xf32>
      tpu.vector_store %arg14[%c5, %c8_302, %c0_303], %191 {strides = array<i32>} : memref<6x32x8xf32, #tpu.memory_space<vmem>>, vector<1x16x8xf32>,
    } else {
    }
    %cst_212 = arith.constant 0.000000e+00 : f32
    %198 = vector.broadcast %cst_212 : f32 to vector<6x1x8xf32>
    %c0_213 = arith.constant 0 : index
    %c7_214 = arith.constant 7 : index
    %c0_215 = arith.constant 0 : index
    %199 = vector.load %arg14[%c0_213, %c7_214, %c0_215] : memref<6x32x8xf32, #tpu.memory_space<vmem>>, vector<6x1x8xf32>
    tpu.vector_store %arg14[%c0_213, %c7_214, %c0_215], %198 {strides = array<i32>} : memref<6x32x8xf32, #tpu.memory_space<vmem>>, vector<6x1x8xf32>,
    %cst_216 = arith.constant 0.000000e+00 : f32
    %200 = vector.broadcast %cst_216 : f32 to vector<6x1x8xf32>
    %c0_217 = arith.constant 0 : index
    %c24_218 = arith.constant 24 : index
    %c0_219 = arith.constant 0 : index
    %201 = vector.load %arg14[%c0_217, %c24_218, %c0_219] : memref<6x32x8xf32, #tpu.memory_space<vmem>>, vector<6x1x8xf32>
    tpu.vector_store %arg14[%c0_217, %c24_218, %c0_219], %200 {strides = array<i32>} : memref<6x32x8xf32, #tpu.memory_space<vmem>>, vector<6x1x8xf32>,
    %cst_220 = arith.constant 0.000000e+00 : f32
    %202 = vector.broadcast %cst_220 : f32 to vector<64x8xf32>
    %c0_221 = arith.constant 0 : index
    %c7_222 = arith.constant 7 : index
    %c0_223 = arith.constant 0 : index
    %203 = vector.load %arg14[%c0_221, %c7_222, %c0_223] : memref<6x32x8xf32, #tpu.memory_space<vmem>>, vector<4x16x8xf32>
    %204 = vector.shape_cast %203 : vector<4x16x8xf32> to vector<64x8xf32>
    %c0_224 = arith.constant 0 : index
    %c0_225 = arith.constant 0 : index
    %c0_226 = arith.constant 0 : index
    %c0_227 = arith.constant 0 : index
    %205 = vector.load %arg6[%c0_224, %c0_225, %c0_226, %c0_227] : memref<3x3x8x8xf32, #tpu.memory_space<vmem>>, vector<1x1x8x8xf32>
    %206 = vector.shape_cast %205 : vector<1x1x8x8xf32> to vector<8x8xf32>
    %cst_228 = arith.constant dense<0.000000e+00> : vector<64x8xf32>
    %207 = tpu.matmul %204, %206, %cst_228 {dimension_numbers = #tpu.dot_dimension_numbers<[1], [0], [0], [1], [0, 0, 1, 1], [], []>} : vector<64x8xf32>, vector<8x8xf32>, vector<64x8xf32> -> vector<64x8xf32>
    %208 = arith.addf %202, %207 : vector<64x8xf32>
    %c0_229 = arith.constant 0 : index
    %c8_230 = arith.constant 8 : index
    %c0_231 = arith.constant 0 : index
    %209 = vector.load %arg14[%c0_229, %c8_230, %c0_231] : memref<6x32x8xf32, #tpu.memory_space<vmem>>, vector<4x16x8xf32>
    %210 = vector.shape_cast %209 : vector<4x16x8xf32> to vector<64x8xf32>
    %c0_232 = arith.constant 0 : index
    %c1_233 = arith.constant 1 : index
    %c0_234 = arith.constant 0 : index
    %c0_235 = arith.constant 0 : index
    %211 = vector.load %arg6[%c0_232, %c1_233, %c0_234, %c0_235] : memref<3x3x8x8xf32, #tpu.memory_space<vmem>>, vector<1x1x8x8xf32>
    %212 = vector.shape_cast %211 : vector<1x1x8x8xf32> to vector<8x8xf32>
    %cst_236 = arith.constant dense<0.000000e+00> : vector<64x8xf32>
    %213 = tpu.matmul %210, %212, %cst_236 {dimension_numbers = #tpu.dot_dimension_numbers<[1], [0], [0], [1], [0, 0, 1, 1], [], []>} : vector<64x8xf32>, vector<8x8xf32>, vector<64x8xf32> -> vector<64x8xf32>
    %214 = arith.addf %208, %213 : vector<64x8xf32>
    %c0_237 = arith.constant 0 : index
    %c9_238 = arith.constant 9 : index
    %c0_239 = arith.constant 0 : index
    %215 = vector.load %arg14[%c0_237, %c9_238, %c0_239] : memref<6x32x8xf32, #tpu.memory_space<vmem>>, vector<4x16x8xf32>
    %216 = vector.shape_cast %215 : vector<4x16x8xf32> to vector<64x8xf32>
    %c0_240 = arith.constant 0 : index
    %c2_241 = arith.constant 2 : index
    %c0_242 = arith.constant 0 : index
    %c0_243 = arith.constant 0 : index
    %217 = vector.load %arg6[%c0_240, %c2_241, %c0_242, %c0_243] : memref<3x3x8x8xf32, #tpu.memory_space<vmem>>, vector<1x1x8x8xf32>
    %218 = vector.shape_cast %217 : vector<1x1x8x8xf32> to vector<8x8xf32>
    %cst_244 = arith.constant dense<0.000000e+00> : vector<64x8xf32>
    %219 = tpu.matmul %216, %218, %cst_244 {dimension_numbers = #tpu.dot_dimension_numbers<[1], [0], [0], [1], [0, 0, 1, 1], [], []>} : vector<64x8xf32>, vector<8x8xf32>, vector<64x8xf32> -> vector<64x8xf32>
    %220 = arith.addf %214, %219 : vector<64x8xf32>
    %c1_245 = arith.constant 1 : index
    %c7_246 = arith.constant 7 : index
    %c0_247 = arith.constant 0 : index
    %221 = vector.load %arg14[%c1_245, %c7_246, %c0_247] : memref<6x32x8xf32, #tpu.memory_space<vmem>>, vector<4x16x8xf32>
    %222 = vector.shape_cast %221 : vector<4x16x8xf32> to vector<64x8xf32>
    %c1_248 = arith.constant 1 : index
    %c0_249 = arith.constant 0 : index
    %c0_250 = arith.constant 0 : index
    %c0_251 = arith.constant 0 : index
    %223 = vector.load %arg6[%c1_248, %c0_249, %c0_250, %c0_251] : memref<3x3x8x8xf32, #tpu.memory_space<vmem>>, vector<1x1x8x8xf32>
    %224 = vector.shape_cast %223 : vector<1x1x8x8xf32> to vector<8x8xf32>
    %cst_252 = arith.constant dense<0.000000e+00> : vector<64x8xf32>
    %225 = tpu.matmul %222, %224, %cst_252 {dimension_numbers = #tpu.dot_dimension_numbers<[1], [0], [0], [1], [0, 0, 1, 1], [], []>} : vector<64x8xf32>, vector<8x8xf32>, vector<64x8xf32> -> vector<64x8xf32>
    %226 = arith.addf %220, %225 : vector<64x8xf32>
    %c1_253 = arith.constant 1 : index
    %c8_254 = arith.constant 8 : index
    %c0_255 = arith.constant 0 : index
    %227 = vector.load %arg14[%c1_253, %c8_254, %c0_255] : memref<6x32x8xf32, #tpu.memory_space<vmem>>, vector<4x16x8xf32>
    %228 = vector.shape_cast %227 : vector<4x16x8xf32> to vector<64x8xf32>
    %c1_256 = arith.constant 1 : index
    %c1_257 = arith.constant 1 : index
    %c0_258 = arith.constant 0 : index
    %c0_259 = arith.constant 0 : index
    %229 = vector.load %arg6[%c1_256, %c1_257, %c0_258, %c0_259] : memref<3x3x8x8xf32, #tpu.memory_space<vmem>>, vector<1x1x8x8xf32>
    %230 = vector.shape_cast %229 : vector<1x1x8x8xf32> to vector<8x8xf32>
    %cst_260 = arith.constant dense<0.000000e+00> : vector<64x8xf32>
    %231 = tpu.matmul %228, %230, %cst_260 {dimension_numbers = #tpu.dot_dimension_numbers<[1], [0], [0], [1], [0, 0, 1, 1], [], []>} : vector<64x8xf32>, vector<8x8xf32>, vector<64x8xf32> -> vector<64x8xf32>
    %232 = arith.addf %226, %231 : vector<64x8xf32>
    %c1_261 = arith.constant 1 : index
    %c9_262 = arith.constant 9 : index
    %c0_263 = arith.constant 0 : index
    %233 = vector.load %arg14[%c1_261, %c9_262, %c0_263] : memref<6x32x8xf32, #tpu.memory_space<vmem>>, vector<4x16x8xf32>
    %234 = vector.shape_cast %233 : vector<4x16x8xf32> to vector<64x8xf32>
    %c1_264 = arith.constant 1 : index
    %c2_265 = arith.constant 2 : index
    %c0_266 = arith.constant 0 : index
    %c0_267 = arith.constant 0 : index
    %235 = vector.load %arg6[%c1_264, %c2_265, %c0_266, %c0_267] : memref<3x3x8x8xf32, #tpu.memory_space<vmem>>, vector<1x1x8x8xf32>
    %236 = vector.shape_cast %235 : vector<1x1x8x8xf32> to vector<8x8xf32>
    %cst_268 = arith.constant dense<0.000000e+00> : vector<64x8xf32>
    %237 = tpu.matmul %234, %236, %cst_268 {dimension_numbers = #tpu.dot_dimension_numbers<[1], [0], [0], [1], [0, 0, 1, 1], [], []>} : vector<64x8xf32>, vector<8x8xf32>, vector<64x8xf32> -> vector<64x8xf32>
    %238 = arith.addf %232, %237 : vector<64x8xf32>
    %c2_269 = arith.constant 2 : index
    %c7_270 = arith.constant 7 : index
    %c0_271 = arith.constant 0 : index
    %239 = vector.load %arg14[%c2_269, %c7_270, %c0_271] : memref<6x32x8xf32, #tpu.memory_space<vmem>>, vector<4x16x8xf32>
    %240 = vector.shape_cast %239 : vector<4x16x8xf32> to vector<64x8xf32>
    %c2_272 = arith.constant 2 : index
    %c0_273 = arith.constant 0 : index
    %c0_274 = arith.constant 0 : index
    %c0_275 = arith.constant 0 : index
    %241 = vector.load %arg6[%c2_272, %c0_273, %c0_274, %c0_275] : memref<3x3x8x8xf32, #tpu.memory_space<vmem>>, vector<1x1x8x8xf32>
    %242 = vector.shape_cast %241 : vector<1x1x8x8xf32> to vector<8x8xf32>
    %cst_276 = arith.constant dense<0.000000e+00> : vector<64x8xf32>
    %243 = tpu.matmul %240, %242, %cst_276 {dimension_numbers = #tpu.dot_dimension_numbers<[1], [0], [0], [1], [0, 0, 1, 1], [], []>} : vector<64x8xf32>, vector<8x8xf32>, vector<64x8xf32> -> vector<64x8xf32>
    %244 = arith.addf %238, %243 : vector<64x8xf32>
    %c2_277 = arith.constant 2 : index
    %c8_278 = arith.constant 8 : index
    %c0_279 = arith.constant 0 : index
    %245 = vector.load %arg14[%c2_277, %c8_278, %c0_279] : memref<6x32x8xf32, #tpu.memory_space<vmem>>, vector<4x16x8xf32>
    %246 = vector.shape_cast %245 : vector<4x16x8xf32> to vector<64x8xf32>
    %c2_280 = arith.constant 2 : index
    %c1_281 = arith.constant 1 : index
    %c0_282 = arith.constant 0 : index
    %c0_283 = arith.constant 0 : index
    %247 = vector.load %arg6[%c2_280, %c1_281, %c0_282, %c0_283] : memref<3x3x8x8xf32, #tpu.memory_space<vmem>>, vector<1x1x8x8xf32>
    %248 = vector.shape_cast %247 : vector<1x1x8x8xf32> to vector<8x8xf32>
    %cst_284 = arith.constant dense<0.000000e+00> : vector<64x8xf32>
    %249 = tpu.matmul %246, %248, %cst_284 {dimension_numbers = #tpu.dot_dimension_numbers<[1], [0], [0], [1], [0, 0, 1, 1], [], []>} : vector<64x8xf32>, vector<8x8xf32>, vector<64x8xf32> -> vector<64x8xf32>
    %250 = arith.addf %244, %249 : vector<64x8xf32>
    %c2_285 = arith.constant 2 : index
    %c9_286 = arith.constant 9 : index
    %c0_287 = arith.constant 0 : index
    %251 = vector.load %arg14[%c2_285, %c9_286, %c0_287] : memref<6x32x8xf32, #tpu.memory_space<vmem>>, vector<4x16x8xf32>
    %252 = vector.shape_cast %251 : vector<4x16x8xf32> to vector<64x8xf32>
    %c2_288 = arith.constant 2 : index
    %c2_289 = arith.constant 2 : index
    %c0_290 = arith.constant 0 : index
    %c0_291 = arith.constant 0 : index
    %253 = vector.load %arg6[%c2_288, %c2_289, %c0_290, %c0_291] : memref<3x3x8x8xf32, #tpu.memory_space<vmem>>, vector<1x1x8x8xf32>
    %254 = vector.shape_cast %253 : vector<1x1x8x8xf32> to vector<8x8xf32>
    %cst_292 = arith.constant dense<0.000000e+00> : vector<64x8xf32>
    %255 = tpu.matmul %252, %254, %cst_292 {dimension_numbers = #tpu.dot_dimension_numbers<[1], [0], [0], [1], [0, 0, 1, 1], [], []>} : vector<64x8xf32>, vector<8x8xf32>, vector<64x8xf32> -> vector<64x8xf32>
    %256 = arith.addf %250, %255 : vector<64x8xf32>
    %c0_293 = arith.constant 0 : index
    %c0_294 = arith.constant 0 : index
    %257 = vector.load %arg9[%c0_293, %c0_294] : memref<1x8xf32, #tpu.memory_space<vmem>>, vector<1x8xf32>
    %258 = vector.broadcast %257 : vector<1x8xf32> to vector<64x8xf32>
    %259 = arith.mulf %256, %258 : vector<64x8xf32>
    %c0_295 = arith.constant 0 : index
    %c0_296 = arith.constant 0 : index
    %260 = vector.load %arg10[%c0_295, %c0_296] : memref<1x8xf32, #tpu.memory_space<vmem>>, vector<1x8xf32>
    %261 = vector.broadcast %260 : vector<1x8xf32> to vector<64x8xf32>
    %262 = arith.addf %259, %261 : vector<64x8xf32>
    %cst_297 = arith.constant 0.000000e+00 : f32
    %263 = vector.broadcast %cst_297 : f32 to vector<64x8xf32>
    %264 = arith.maximumf %262, %263 : vector<64x8xf32>
    %265 = vector.shape_cast %264 : vector<64x8xf32> to vector<4x16x8xf32>
    %c0_298 = arith.constant 0 : index
    %c0_299 = arith.constant 0 : index
    %c0_300 = arith.constant 0 : index
    %c0_301 = arith.constant 0 : index
    %266 = vector.load %arg11[%c0_298, %c0_299, %c0_300, %c0_301] : memref<1x4x16x8xf32, #tpu.memory_space<vmem>>, vector<1x4x16x8xf32>
    %267 = vector.shape_cast %266 : vector<1x4x16x8xf32> to vector<4x16x8xf32>
    %268 = vector.shape_cast %265 : vector<4x16x8xf32> to vector<1x4x16x8xf32>
    tpu.vector_store %arg11[%c0_298, %c0_299, %c0_300, %c0_301], %268 {strides = array<i32>} : memref<1x4x16x8xf32, #tpu.memory_space<vmem>>, vector<1x4x16x8xf32>,
    return
  }
  func.func @transform_0(%arg0: i32, %arg1: i32) -> (i32, i32, i32, i32) {
    %c0_i32 = arith.constant 0 : i32
    %c0_i32_0 = arith.constant 0 : i32
    %c0_i32_1 = arith.constant 0 : i32
    %c0_i32_2 = arith.constant 0 : i32
    return %arg0, %c0_i32, %c0_i32_0, %c0_i32_1 : i32, i32, i32, i32
  }
  func.func @transform_1(%arg0: i32, %arg1: i32) -> (i32, i32, i32, i32) {
    %c0_i32 = arith.constant 0 : i32
    %c0_i32_0 = arith.constant 0 : i32
    %c0_i32_1 = arith.constant 0 : i32
    %c0_i32_2 = arith.constant 0 : i32
    return %arg0, %c0_i32, %c0_i32_0, %c0_i32_1 : i32, i32, i32, i32
  }
  func.func @transform_2(%arg0: i32, %arg1: i32) -> (i32, i32, i32, i32) {
    %c0_i32 = arith.constant 0 : i32
    %c0_i32_0 = arith.constant 0 : i32
    %c0_i32_1 = arith.constant 0 : i32
    %c0_i32_2 = arith.constant 0 : i32
    %c0_i32_3 = arith.constant 0 : i32
    return %c0_i32, %c0_i32_0, %c0_i32_1, %c0_i32_2 : i32, i32, i32, i32
  }
  func.func @transform_3(%arg0: i32, %arg1: i32) -> (i32, i32, i32, i32) {
    %c0_i32 = arith.constant 0 : i32
    %c0_i32_0 = arith.constant 0 : i32
    %c0_i32_1 = arith.constant 0 : i32
    %c0_i32_2 = arith.constant 0 : i32
    %c0_i32_3 = arith.constant 0 : i32
    return %c0_i32, %c0_i32_0, %c0_i32_1, %c0_i32_2 : i32, i32, i32, i32
  }
  func.func @transform_4(%arg0: i32, %arg1: i32) -> (i32, i32, i32, i32) {
    %c0_i32 = arith.constant 0 : i32
    %c0_i32_0 = arith.constant 0 : i32
    %c0_i32_1 = arith.constant 0 : i32
    %c0_i32_2 = arith.constant 0 : i32
    %c0_i32_3 = arith.constant 0 : i32
    return %c0_i32, %c0_i32_0, %c0_i32_1, %c0_i32_2 : i32, i32, i32, i32
  }
  func.func @transform_5(%arg0: i32, %arg1: i32) -> (i32, i32) {
    %c0_i32 = arith.constant 0 : i32
    %c0_i32_0 = arith.constant 0 : i32
    %c0_i32_1 = arith.constant 0 : i32
    return %c0_i32, %c0_i32_0 : i32, i32
  }
  func.func @transform_6(%arg0: i32, %arg1: i32) -> (i32, i32) {
    %c0_i32 = arith.constant 0 : i32
    %c0_i32_0 = arith.constant 0 : i32
    %c0_i32_1 = arith.constant 0 : i32
    return %c0_i32, %c0_i32_0 : i32, i32
  }
  func.func @transform_7(%arg0: i32, %arg1: i32) -> (i32, i32) {
    %c0_i32 = arith.constant 0 : i32
    %c0_i32_0 = arith.constant 0 : i32
    %c0_i32_1 = arith.constant 0 : i32
    return %c0_i32, %c0_i32_0 : i32, i32
  }
  func.func @transform_8(%arg0: i32, %arg1: i32) -> (i32, i32) {
    %c0_i32 = arith.constant 0 : i32
    %c0_i32_0 = arith.constant 0 : i32
    %c0_i32_1 = arith.constant 0 : i32
    return %c0_i32, %c0_i32_0 : i32, i32
  }
  func.func @transform_9(%arg0: i32, %arg1: i32) -> (i32, i32, i32, i32) {
    %c0_i32 = arith.constant 0 : i32
    %c0_i32_0 = arith.constant 0 : i32
    %c0_i32_1 = arith.constant 0 : i32
    return %arg0, %arg1, %c0_i32, %c0_i32_0 : i32, i32, i32, i32
  }
}

</mosaic_0001>

<bundles_post_ra>
// kernel: decoder_block_forward.1
= control target key start
LH: loop header
LB: loop body
LE: loop exit
PB: predicated region body
PF: predicated region fallthrough
CT: control target
= control target key end

     0   :  { %s7561_s30 = smov 0   ;;  %s7563_s10 = smov 0   ;;  %s8811_s0 = inlined_call_operand.vmem [shape: f32[2,8,8,4], index: 0, kind: input, shape index: {}]   ;;  %s8812_s1 = inlined_call_operand.vmem [shape: f32[2,16,16,4], index: 1, kind: input, shape index: {}]   ;;  %s8813_s2 = inlined_call_operand.vmem [shape: f32[3,3,4,8], index: 2, kind: input, shape index: {}]   ;;  %s8814_s3 = inlined_call_operand.vmem [shape: f32[3,3,4,8], index: 3, kind: input, shape index: {}]   ;;  %s8815_s4 = inlined_call_operand.vmem [shape: f32[3,3,8,8], index: 4, kind: input, shape index: {}]   ;;  %s8816_s5 = inlined_call_operand.vmem [shape: f32[1,8], index: 5, kind: input, shape index: {}]   ;;  %s8817_s6 = inlined_call_operand.vmem [shape: f32[1,8], index: 6, kind: input, shape index: {}]   ;;  %s8818_s7 = inlined_call_operand.vmem [shape: f32[1,8], index: 7, kind: input, shape index: {}]   ;;  %s8819_s8 = inlined_call_operand.vmem [shape: f32[1,8], index: 8, kind: input, shape index: {}]   ;;  %s8820_s9 = inlined_call_operand.vmem [shape: f32[2,16,16,8], index: 9, kind: output, shape index: {}]  }
   0x1   :  { %s7565_s11 = smov 0   ;;  %s7567_s12 = smov 0  }
   0x2   :  { %s7569_s13 = smov 0  }
   0x3 LB: > { %s28_s14 = sadd.s32 1, %s7496_s11  ;;  %s31_s15 = sadd.s32 1, %s7500_s12  ;;  %s7504_s13 = sphi %s7569_s13, %s19_s13   ;;  %s7500_s12 = sphi %s7567_s12, %s8825_s12   ;;  %s7496_s11 = sphi %s7565_s11, %s8824_s11   ;;  %s7492_s10 = sphi %s7563_s10, %s8823_s10   ;;  %s7488_s30 = sphi %s7561_s30, %s8822_s30  }
   0x4   : > { %p29_p0 = scmp.ge.s32.totalorder %s28_s14, 4  ;;  %p5985_p1 = scmp.ge.s32.totalorder %s7504_s13, 1 }
   0x5   : > { %p311_p2 = scmp.lt.s32.totalorder %s7504_s13, 9 }
   0x6   : > { %s8827_s14 = smov (%p29_p0, %s28_s14), 0  ;;  %s8829_s15 = smov (!%p29_p0, %s31_s15), %s7500_s12 }
   0x7   : > { %p312_p3 = pnand %p5985_p1, %p311_p2  ;;  %p33_p4 = scmp.ge.s32.totalorder %s8829_s15, 2 }
   0x8   : > { %vm1092_vm0 = vcmask (!%p312_p3), 1043456   ;;  %v6088_v0 = vld [vmem:[%s8813_s2 + $0x18] sm:$0xf] (!%p312_p3)  ;;  %p357_p5 = scmp.lt.s32.totalorder (!%p312_p3), %s7492_s10, 1  ;;  %s6345_s18 = sshll.u32 (!%p312_p3), %s7488_s30, 4  ;;  %v394_v1 = vlaneseq (!%p312_p3)  ;;  %vm942_vm1 = vcmask (!%p312_p3), 24576  }
   0x9   : > { %s8831_s15 = smov (%p33_p4, %s8829_s15), 0  ;;  %315 = sbr.rel (%p312_p3) target bundleno = 930 (0x3a2), region = 56 }
   0xa   : > { %6784 = vmatprep.subr.msk.mxu0 (!%p312_p3), %vm1092_vm0, %v6088_v0  ;;  %v7506_v2 = vmov (!%p312_p3), 1966171168   ;;  %v7601_v4 = vshrl.u32 (!%p312_p3), %v394_v1, 7  ;;  %v7507_v5 = vmov (!%p312_p3), 1983009808   ;;  %v7508_v7 = vmov (!%p312_p3), 0.0  }
   0xb   : > { %6785 = vmatpush3.msk.msra.mxu0 (!%p312_p3), %vm1092_vm0, %v6088_v0  ;;  %v392_v3 = vunpack.c.l.s4 (!%p312_p3), %v7506_v2  ;;  %v555_v6 = vunpack.c.l.s4 (!%p312_p3), %v7507_v5  ;;  %945 = vst.msk [vmem:[#allocation2 + $0x47] sm:$0x1] (!%p312_p3), %vm942_vm1, %v7508_v7  ;;  %943 = vst.msk [vmem:[#allocation2 + $0x7] sm:$0x1] (!%p312_p3), %vm942_vm1, %v7508_v7  ;;  %v7670_v8 = vld [vmem:[%s8813_s2 + $0x1c] sm:$0xf] (!%p312_p3) }
   0xc   : > { %944 = vst.msk [vmem:[#allocation2 + $0x27] sm:$0x1] (!%p312_p3), %vm942_vm1, %v7508_v7  ;;  %946 = vst.msk [vmem:[#allocation2 + $0x67] sm:$0x1] (!%p312_p3), %vm942_vm1, %v7508_v7  ;;  %v6005_v9 = vld [vmem:[%s8813_s2 + $0x4] sm:$0xf] (!%p312_p3)  ;;  %6804 = vmatprep.subr.msk.mxu0 (!%p312_p3), %vm1092_vm0, %v7670_v8 }
   0xd   : > { %947 = vst.msk [vmem:[#allocation2 + $0x87] sm:$0x1] (!%p312_p3), %vm942_vm1, %v7508_v7  ;;  %948 = vst.msk [vmem:[#allocation2 + $0xa7] sm:$0x1] (!%p312_p3), %vm942_vm1, %v7508_v7  ;;  %p381_p6 = scmp.eq.s32.totalorder (!%p312_p3), %s7488_s30, 3  ;;  %s5995_s23 = sshll.u32 (!%p312_p3), %s7488_s30, 1  ;;  %6664 = vmatprep.subr.msk.mxu1 (!%p312_p3), %vm1092_vm0, %v6005_v9  ;;  %v393_v11 = vunpack.c.0.s8 (!%p312_p3), %v392_v3  ;;  %v556_v12 = vunpack.c.0.s8 (!%p312_p3), %v555_v6 }
   0xe   : > { %949 = vst.msk [vmem:[#allocation2 + $0xc7] sm:$0x1] (!%p312_p3), %vm942_vm1, %v7508_v7  ;;  %950 = vst.msk [vmem:[#allocation2 + $0xe7] sm:$0x1] (!%p312_p3), %vm942_vm1, %v7508_v7  ;;  %v7683_v10 = vld [vmem:[%s8813_s2] sm:$0xf] (!%p312_p3)  ;;  %6665 = vmatpush3.msk.msra.mxu1 (!%p312_p3), %vm1092_vm0, %v6005_v9 }
   0xf   : > { %951 = vst.msk [vmem:[#allocation2 + $0x18] sm:$0x1] (!%p312_p3), %vm942_vm1, %v7508_v7  ;;  %952 = vst.msk [vmem:[#allocation2 + $0x38] sm:$0x1] (!%p312_p3), %vm942_vm1, %v7508_v7  ;;  %s6347_s27 = sadd.s32 (!%p312_p3), 2, %s5995_s23  ;;  %6684 = vmatprep.subr.msk.mxu1 (!%p312_p3), %vm1092_vm0, %v7683_v10  ;;  %v7698_v13 = vsub.s32 (!%p312_p3), %v393_v11, %v7601_v4  ;;  %p379_p8 = scmp.eq.s32.totalorder (!%p312_p3), %s7488_s30, 0  ;;  %v7711_v21 = vsub.s32 (!%p312_p3), %v556_v12, %v7601_v4 }
  0x10   : > { %s8833_s10 = smov (!%p357_p5, %s7492_s10), 1  ;;  %953 = vst.msk [vmem:[#allocation2 + $0x58] sm:$0x1] %vm942_vm1, %v7508_v7  ;;  %954 = vst.msk [vmem:[#allocation2 + $0x78] sm:$0x1] %vm942_vm1, %v7508_v7  ;;  %p789_p7 = scmp.lt.s32.totalorder %s6347_s27, 7 }
  0x11   : > { %955 = vst.msk [vmem:[#allocation2 + $0x98] sm:$0x1] %vm942_vm1, %v7508_v7  ;;  %956 = vst.msk [vmem:[#allocation2 + $0xb8] sm:$0x1] %vm942_vm1, %v7508_v7  ;;  %s6343_s26 = sshll.u32 %s8833_s10, 6  ;;  %v7702_v16 = vsub.s32 0, %v7601_v4 }
  0x12   : > { %957 = vst.msk [vmem:[#allocation2 + $0xd8] sm:$0x1] %vm942_vm1, %v7508_v7  ;;  %958 = vst.msk [vmem:[#allocation2 + $0xf8] sm:$0x1] %vm942_vm1, %v7508_v7  ;;  %s7690_s16 = scalar_lea.vmem %s8811_s0, %s6343_s26  ;;  %s8835_s27 = smov (!%p789_p7, %s6347_s27), 7  ;;  %vm625_vm2 = vcmask 31744  }
  0x13   : > { %1013 = vst.msk [vmem:[#allocation3 + $0x7] sm:$0x1] %vm942_vm1, %v7508_v7  ;;  %1014 = vst.msk [vmem:[#allocation3 + $0x27] sm:$0x1] %vm942_vm1, %v7508_v7  ;;  %s385_s17 = scalar_lea.vmem %s7690_s16, %s6345_s18  ;;  %s5997_s20 = sadd.s32 4294967295, %s5995_s23  ;;  %vm4476_vm3 = vcmask 64512  }
  0x14   : > { %1015 = vst.msk [vmem:[#allocation3 + $0x47] sm:$0x1] %vm942_vm1, %v7508_v7  ;;  %1016 = vst.msk [vmem:[#allocation3 + $0x67] sm:$0x1] %vm942_vm1, %v7508_v7  ;;  %v386_v14 = vld [vmem:[%s385_s17] sm:$0xff]  ;;  %v387_v15 = vld [vmem:[%s385_s17 + $0x8] sm:$0xff] }
  0x15   : > { %1017 = vst.msk [vmem:[#allocation3 + $0x87] sm:$0x1] %vm942_vm1, %v7508_v7  ;;  %1018 = vst.msk [vmem:[#allocation3 + $0xa7] sm:$0x1] %vm942_vm1, %v7508_v7  ;;  %s382_s19 = scalar_select %p381_p6, 0.0, 1.0  ;;  %v390_v17 = vcombine.high %v386_v14, %v386_v14  ;;  %v397_v18 = vrot.slane %v386_v14, %v7698_v13  ;;  %v439_v19 = vcombine.high %v387_v15, %v387_v15 }
  0x16   : > { %1019 = vst.msk [vmem:[#allocation3 + $0xc7] sm:$0x1] %vm942_vm1, %v7508_v7  ;;  %1020 = vst.msk [vmem:[#allocation3 + $0xe7] sm:$0x1] %vm942_vm1, %v7508_v7  ;;  %v446_v20 = vrot.slane %v387_v15, %v7698_v13  ;;  %s380_s18 = scalar_select %p379_p8, 0.0, 1.0 }
  0x17   : > { %1021 = vst.msk [vmem:[#allocation3 + $0x18] sm:$0x1] %vm942_vm1, %v7508_v7  ;;  %1022 = vst.msk [vmem:[#allocation3 + $0x38] sm:$0x1] %vm942_vm1, %v7508_v7  ;;  %v405_v22 = vcombine.high %v397_v18, %v397_v18  ;;  %v413_v23 = vrot.slane %v397_v18, %v7698_v13  ;;  %v404_v24 = vrot.slane %v390_v17, %v7698_v13  ;;  %s6000_s21 = sshll.u32 %s8835_s27, 3  ;;  %v7720_v28 = vstv %s382_s19  ;;  %p635_p9 = scmp.gt.s32.totalorder %s5997_s20, 0 }
  0x18   : > { %1023 = vst.msk [vmem:[#allocation3 + $0x58] sm:$0x1] %vm942_vm1, %v7508_v7  ;;  %1024 = vst.msk [vmem:[#allocation3 + $0x78] sm:$0x1] %vm942_vm1, %v7508_v7  ;;  %v454_v25 = vcombine.high %v446_v20, %v446_v20  ;;  %v462_v26 = vrot.slane %v446_v20, %v7698_v13  ;;  %v7717_v27 = vrot.slane %v439_v19, %v7698_v13  ;;  %v7722_v29 = vstv %s380_s18  ;;  %s6344_s22 = sshll.u32 %s8833_s10, 8  ;;  %s7728_s23 = sshll.u32 %s7488_s30, 2 }
  0x19   : > { %1025 = vst.msk [vmem:[#allocation3 + $0x98] sm:$0x1] %vm942_vm1, %v7508_v7  ;;  %1026 = vst.msk [vmem:[#allocation3 + $0xb8] sm:$0x1] %vm942_vm1, %v7508_v7  ;;  %v427_v30 = vrot.slane %v405_v22, %v7698_v13  ;;  %v435_v31 = vcombine.high %v413_v23, %v413_v23  ;;  %v491_v32 = vrot.slane %v413_v23, %v7702_v16  ;;  %s8837_s20 = smov (!%p635_p9, %s5997_s20), 0  ;;  %s792_s24 = scalar_lea.vmem %s7690_s16, %s6000_s21 }
  0x1a   : > { %1027 = vst.msk [vmem:[#allocation3 + $0xd8] sm:$0x1] %vm942_vm1, %v7508_v7  ;;  %1028 = vst.msk [vmem:[#allocation3 + $0xf8] sm:$0x1] %vm942_vm1, %v7508_v7  ;;  %v406_v33 = vcombine.high %v404_v24, %v404_v24  ;;  %v420_v34 = vrot.slane %v404_v24, %v7698_v13  ;;  %v476_v35 = vrot.slane %v454_v25, %v7698_v13  ;;  %p370_p10 = scmp.lt.s32.totalorder %s7728_s23, 15  ;;  %s5998_s25 = sshll.u32 %s8837_s20, 3 }
  0x1b   : > { %v484_v36 = vcombine.high %v462_v26, %v462_v26  ;;  %v523_v37 = vrot.slane %v462_v26, %v7702_v16  ;;  %v437_v38 = vcombine.high %v427_v30, %v427_v30  ;;  %v495_v39 = vrot.slane %v427_v30, %v7702_v16  ;;  %s7746_s28 = scalar_lea.vmem %s8812_s1, %s6344_s22  ;;  %s5992_s29 = sshll.u32 %s8833_s10, 5  ;;  %v7755_v54 = vld [vmem:[%s792_s24] sm:$0xff] }
  0x1c   : > { %v499_v40 = vrot.slane %v435_v31, %v7702_v16  ;;  %v434_v41 = vrot.slane %v406_v33, %v7698_v13  ;;  %v436_v42 = vcombine.high %v420_v34, %v420_v34  ;;  %v507_v43 = vrot.slane %v420_v34, %v7702_v16  ;;  %s6348_s17 = sshll.u32 %s7488_s30, 6  ;;  %s6002_s18 = sadd.s32 4294967294, %s7728_s23 }
  0x1d   : > { %v486_v44 = vcombine.high %v476_v35, %v476_v35  ;;  %v527_v45 = vrot.slane %v476_v35, %v7702_v16  ;;  %v503_v46 = vrot.slane %v437_v38, %v7702_v16  ;;  %v552_v47 = vcombine.low %v491_v32, %v495_v39  ;;  %s371_s19 = scalar_select %p370_p10, %s7728_s23, 15 }
  0x1e   : > { %v438_v48 = vcombine.high %v434_v41, %v434_v41  ;;  %v511_v49 = vrot.slane %v434_v41, %v7702_v16  ;;  %v515_v50 = vrot.slane %v436_v42, %v7702_v16  ;;  %v531_v51 = vrot.slane %v484_v36, %v7702_v16  ;;  %s7763_s10 = scalar_lea.vmem %s7746_s28, %s6348_s17  ;;  %s7772_s20 = scalar_lea.vmem %s7690_s16, %s5998_s25 }
  0x1f   : > { %v535_v52 = vrot.slane %v486_v44, %v7702_v16  ;;  %v586_v53 = vcombine.low %v523_v37, %v527_v45  ;;  %v553_v55 = vcombine.low %v499_v40, %v503_v46  ;;  %v560_v56 = vrot.slane %v552_v47, %v7711_v21  ;;  %s5991_s21 = sshll.u32 %s371_s19, 1  ;;  %v961_v63 = vld [vmem:[%s7763_s10] sm:$0xff]  ;;  %v962_v0 = vld [vmem:[%s7763_s10 + $0x8] sm:$0xff]  ;;  %v963_v1 = vld [vmem:[%s7763_s10 + $0x10] sm:$0xff]  ;;  %p7792_p11 = scmp.gt.s32.totalorder %s6002_s18, 0 }
  0x20   : > { %v519_v57 = vrot.slane %v438_v48, %v7702_v16  ;;  %v569_v58 = vcombine.low %v507_v43, %v511_v49  ;;  %v455_v61 = vcombine.high %v7717_v27, %v7717_v27  ;;  %v469_v62 = vrot.slane %v7717_v27, %v7698_v13  ;;  %s374_s22 = sadd.s32 %s5992_s29, %s5991_s21  ;;  %970 = vst.msk [vmem:[#allocation3 + $0x48] sm:$0xff] %vm625_vm2, %v961_v63  ;;  %v964_v6 = vld [vmem:[%s7763_s10 + $0x18] sm:$0xff]  ;;  %v965_v9 = vld [vmem:[%s7763_s10 + $0x20] sm:$0xff]  ;;  %v966_v11 = vld [vmem:[%s7763_s10 + $0x28] sm:$0xff]  ;;  %p6257_p13 = scmp.ne.s32.totalorder %s7488_s30, 0 }
  0x21   : > { %v587_v59 = vcombine.low %v531_v51, %v535_v52  ;;  %v594_v60 = vrot.slane %v586_v53, %v7711_v21  ;;  %v567_v2 = vrot.slane %v553_v55, %v7711_v21  ;;  %v802_v5 = vrot.slane %v7755_v54, %v7698_v13  ;;  %971 = vst.msk [vmem:[#allocation3 + $0x50] sm:$0xff] %vm625_vm2, %v962_v0  ;;  %s5993_s16 = sshll.u32 %s374_s22, 3  ;;  %v967_v18 = vld [vmem:[%s7763_s10 + $0x30] sm:$0xff]  ;;  %v968_v19 = vld [vmem:[%s7763_s10 + $0x38] sm:$0xff]  ;;  %v639_v25 = vld [vmem:[%s7772_s20] sm:$0xff]  ;;  %s8839_s18 = smov (!%p7792_p11, %s6002_s18), 0 }
  0x22   : > { %v570_v3 = vcombine.low %v515_v50, %v519_v57  ;;  %v577_v4 = vrot.slane %v569_v58, %v7711_v21  ;;  %972 = vst.msk [vmem:[#allocation3 + $0x68] sm:$0xff] %vm625_vm2, %v963_v1  ;;  %v483_v14 = vrot.slane %v455_v61, %v7698_v13  ;;  %v485_v15 = vcombine.high %v469_v62, %v469_v62  ;;  %s7807_s27 = scalar_lea.vmem %s8820_s9, %s5993_s16  ;;  %s6003_s29 = sshll.u32 %s8839_s18, 4 }
  0x23   : > { %v601_v12 = vrot.slane %v587_v59, %v7711_v21  ;;  %v539_v17 = vrot.slane %v469_v62, %v7702_v16  ;;  %973 = vst.msk [vmem:[#allocation3 + $0x70] sm:$0xff] %vm625_vm2, %v964_v6  ;;  %974 = vst.msk [vmem:[#allocation3 + $0x88] sm:$0xff] %vm625_vm2, %v965_v9  ;;  %v568_v20 = vcombine.low %v560_v56, %v567_v2  ;;  %s7856_s17 = scalar_lea.vmem %s7746_s28, %s6003_s29  ;;  %s995_s18 = sadd.s32 4, %s7728_s23 }
  0x24   : > { %975 = vst.msk [vmem:[#allocation3 + $0x90] sm:$0xff] %vm625_vm2, %v966_v11  ;;  %v584_v22 = vrot.slane %v570_v3, %v7711_v21  ;;  %v810_v23 = vcombine.high %v802_v5, %v802_v5  ;;  %v818_v24 = vrot.slane %v802_v5, %v7698_v13  ;;  %976 = vst.msk [vmem:[#allocation3 + $0xa8] sm:$0xff] %vm625_vm2, %v967_v18  ;;  %p996_p12 = scmp.lt.s32.totalorder %s995_s18, 14 }
  0x25   : > { %977 = vst.msk [vmem:[#allocation3 + $0xb0] sm:$0xff] %vm625_vm2, %v968_v19  ;;  %v602_v26 = vcombine.low %v594_v60, %v601_v12  ;;  %v487_v27 = vcombine.high %v483_v14, %v483_v14  ;;  %v543_v30 = vrot.slane %v483_v14, %v7702_v16  ;;  %v547_v31 = vrot.slane %v485_v15, %v7702_v16  ;;  %v7868_v15 = vld [vmem:[%s8813_s2 + $0x20] sm:$0xf] }
  0x26   : > { %626 = vst.msk [vmem:[#allocation2 + $0x48] sm:$0xff] %vm625_vm2, %v568_v20  ;;  %628 = vst.msk [vmem:[#allocation2 + $0x68] sm:$0xff] %vm625_vm2, %v568_v20  ;;  %v585_v32 = vcombine.low %v577_v4, %v584_v22  ;;  %v832_v33 = vrot.slane %v810_v23, %v7698_v13  ;;  %v840_v34 = vcombine.high %v818_v24, %v818_v24  ;;  %s8841_s18 = smov (!%p996_p12, %s995_s18), 14 }
  0x27   : > { %v847_v35 = vrot.slane %v818_v24, %v7702_v16  ;;  %630 = vst.msk [vmem:[#allocation2 + $0x88] sm:$0xff] %vm625_vm2, %v602_v26  ;;  %632 = vst.msk [vmem:[#allocation2 + $0xa8] sm:$0xff] %vm625_vm2, %v602_v26  ;;  %v551_v36 = vrot.slane %v487_v27, %v7702_v16  ;;  %v603_v37 = vcombine.low %v539_v17, %v543_v30  ;;  %v983_v26 = vld [vmem:[%s7856_s17] sm:$0xff]  ;;  %s6004_s20 = sshll.u32 %s8841_s18, 4 }
  0x28   : > { %v795_v38 = vcombine.high %v7755_v54, %v7755_v54  ;;  %v641_v39 = vcombine.high %v639_v25, %v639_v25  ;;  %627 = vst.msk [vmem:[#allocation2 + $0x50] sm:$0xff] %vm625_vm2, %v585_v32  ;;  %629 = vst.msk [vmem:[#allocation2 + $0x70] sm:$0xff] %vm625_vm2, %v585_v32  ;;  %v842_v40 = vcombine.high %v832_v33, %v832_v33  ;;  %s7974_s22 = scalar_lea.vmem %s7746_s28, %s6004_s20 }
  0x29   : > { %v851_v41 = vrot.slane %v832_v33, %v7702_v16  ;;  %v855_v42 = vrot.slane %v840_v34, %v7702_v16  ;;  %v885_v43 = vmul.f32 %v7720_v28, %v847_v35  ;;  %v604_v44 = vcombine.low %v547_v31, %v551_v36 }
  0x2a   : > { %v611_v45 = vrot.slane %v603_v37, %v7711_v21  ;;  %v809_v46 = vrot.slane %v795_v38, %v7698_v13  ;;  %v648_v47 = vrot.slane %v639_v25, %v7698_v13  ;;  %v859_v48 = vrot.slane %v842_v40, %v7702_v16 }
  0x2b   : > { %v886_v49 = vmul.f32 %v7720_v28, %v851_v41  ;;  %v887_v50 = vmul.f32 %v7720_v28, %v855_v42  ;;  %v655_v51 = vrot.slane %v641_v39, %v7698_v13  ;;  %v618_v52 = vrot.slane %v604_v44, %v7711_v21  ;;  %v984_v41 = vld [vmem:[%s7856_s17 + $0x8] sm:$0xff] }
  0x2c   : > { %v811_v53 = vcombine.high %v809_v46, %v809_v46  ;;  %v825_v54 = vrot.slane %v809_v46, %v7698_v13  ;;  %v656_v55 = vcombine.high %v648_v47, %v648_v47  ;;  %v888_v56 = vmul.f32 %v7720_v28, %v859_v48  ;;  %v985_v46 = vld [vmem:[%s7856_s17 + $0x10] sm:$0xff] }
  0x2d   : > { %v901_v57 = vcombine.low %v885_v43, %v886_v49  ;;  %v664_v58 = vrot.slane %v648_v47, %v7698_v13  ;;  %v657_v59 = vcombine.high %v655_v51, %v655_v51  ;;  %v7845_v60 = vld [vmem:[#allocation2 + $0x47] sm:$0xff]  ;;  %v619_v61 = vcombine.low %v611_v45, %v618_v52  ;;  %v986_v52 = vld [vmem:[%s7856_s17 + $0x18] sm:$0xff] }
  0x2e   : > { %v839_v62 = vrot.slane %v811_v53, %v7698_v13  ;;  %v841_v63 = vcombine.high %v825_v54, %v825_v54  ;;  %v863_v0 = vrot.slane %v825_v54, %v7702_v16  ;;  %6786 = vmatprep.mubr.msk.f32.mxu0 %vm625_vm2, %v7845_v60  ;;  %v7851_v1 = vld [vmem:[#allocation2 + $0x67] sm:$0xff]  ;;  %v902_v2 = vcombine.low %v887_v50, %v888_v56 }
  0x2f   : > { %v909_v3 = vrot.slane %v901_v57, %v7711_v21  ;;  %v678_v4 = vrot.slane %v656_v55, %v7698_v13  ;;  %v686_v5 = vcombine.high %v664_v58, %v664_v58  ;;  %v7858_v6 = vld [vmem:[#allocation2 + $0x4f] sm:$0xff]  ;;  %631 = vst.msk [vmem:[#allocation2 + $0x90] sm:$0xff] %vm625_vm2, %v619_v61  ;;  %633 = vst.msk [vmem:[#allocation2 + $0xb0] sm:$0xff] %vm625_vm2, %v619_v61  ;;  %v7885_v27 = vld [vmem:[#allocation2 + $0x87] sm:$0xff] }
  0x30   : > { %v843_v9 = vcombine.high %v839_v62, %v839_v62  ;;  %v867_v11 = vrot.slane %v839_v62, %v7702_v16  ;;  %v871_v12 = vrot.slane %v841_v63, %v7702_v16  ;;  %v889_v14 = vmul.f32 %v7720_v28, %v863_v0  ;;  %6787 = vmatmul.mubr.msk.f32.vlgmr.msra.gmra.mrb[0].mxu0 %vm625_vm2, %v7858_v6  ;;  %v7879_v22 = vld [vmem:[#allocation2 + $0x6f] sm:$0xff]  ;;  %v7910_v48 = vld [vmem:[#allocation2 + $0xa7] sm:$0xff] }
  0x31   : > { %v916_v17 = vrot.slane %v902_v2, %v7711_v21  ;;  %v688_v18 = vcombine.high %v678_v4, %v678_v4  ;;  %v693_v19 = vrot.slane %v664_v58, %v7702_v16  ;;  %v697_v20 = vrot.slane %v678_v4, %v7702_v16  ;;  %6805 = vmatpush3.msk.msra.mxu0 %vm1092_vm0, %v7670_v8 }
  0x32   : > { %6789 = vmatprep.mubr.msk.f32.mxu0 %vm625_vm2, %v7851_v1  ;;  %v875_v23 = vrot.slane %v843_v9, %v7702_v16  ;;  %v890_v24 = vmul.f32 %v7720_v28, %v867_v11  ;;  %v891_v25 = vmul.f32 %v7720_v28, %v871_v12  ;;  %v701_v31 = vrot.slane %v686_v5, %v7702_v16 }
  0x33   : > { %v917_v30 = vcombine.low %v909_v3, %v916_v17  ;;  %v705_v8 = vrot.slane %v688_v18, %v7702_v16  ;;  %v731_v32 = vmul.f32 %v7722_v29, %v693_v19  ;;  %6824 = vmatprep.subr.msk.mxu0 %vm1092_vm0, %v7868_v15  ;;  %v732_v35 = vmul.f32 %v7722_v29, %v697_v20 }
  0x34   : > { %v892_v33 = vmul.f32 %v7720_v28, %v875_v23  ;;  %v918_v34 = vcombine.low %v889_v14, %v890_v24  ;;  %v671_v36 = vrot.slane %v655_v51, %v7698_v13  ;;  %6790 = vmatmul.mubr.msk.f32.gmra.mrb[2].mxu0 %vm625_vm2, %v7879_v22  ;;  %v733_v37 = vmul.f32 %v7722_v29, %v701_v31  ;;  %v7963_v23 = vld [vmem:[#allocation2 + $0x50] sm:$0xff] }
  0x35   : > { %938 = vst.msk [vmem:[#allocation2 + $0xc8] sm:$0xff] %vm625_vm2, %v917_v30  ;;  %940 = vst.msk [vmem:[#allocation2 + $0xe8] sm:$0xff] %vm625_vm2, %v917_v30  ;;  %v734_v38 = vmul.f32 %v7722_v29, %v705_v8  ;;  %v685_v39 = vrot.slane %v657_v59, %v7698_v13  ;;  %v987_v40 = vmul.f32 %v983_v26, %v7722_v29  ;;  %6792 = vmatprep.mubr.msk.f32.mxu0 %vm625_vm2, %v7885_v27  ;;  %v7967_v26 = vld [vmem:[#allocation2 + $0x68] sm:$0xff]  ;;  %v2728_v30 = vld [vmem:[%s8814_s3] sm:$0xf] }
  0x36   : > { %v919_v42 = vcombine.low %v891_v25, %v892_v33  ;;  %v926_v43 = vrot.slane %v918_v34, %v7711_v21  ;;  %v747_v44 = vcombine.low %v731_v32, %v732_v35  ;;  %v687_v45 = vcombine.high %v671_v36, %v671_v36  ;;  %v7908_v47 = vld [vmem:[#allocation2 + $0x8f] sm:$0xff]  ;;  %v6032_v8 = vld [vmem:[%s8813_s2 + $0x8] sm:$0xf]  ;;  %v1000_v32 = vld [vmem:[%s7974_s22] sm:$0xff] }
  0x37   : > { %v748_v49 = vcombine.low %v733_v37, %v734_v38  ;;  %v689_v50 = vcombine.high %v685_v39, %v685_v39  ;;  %v709_v13 = vrot.slane %v671_v36, %v7702_v16  ;;  %v713_v51 = vrot.slane %v685_v39, %v7702_v16  ;;  %991 = vst.msk [vmem:[#allocation3 + $0x8] sm:$0xff] %vm625_vm2, %v987_v40  ;;  %v7928_v62 = vld [vmem:[#allocation2 + $0xaf] sm:$0xff] }
  0x38   : > { %v933_v53 = vrot.slane %v919_v42, %v7711_v21  ;;  %v755_v54 = vrot.slane %v747_v44, %v7711_v21  ;;  %v717_v55 = vrot.slane %v687_v45, %v7702_v16  ;;  %v988_v56 = vmul.f32 %v984_v41, %v7722_v29  ;;  %6793 = vmatmul.mubr.msk.f32.gmra.mrb[4].mxu0 %vm625_vm2, %v7908_v47  ;;  %v7990_v33 = vld [vmem:[#allocation2 + $0x70] sm:$0xff]  ;;  %v1001_v35 = vld [vmem:[%s7974_s22 + $0x8] sm:$0xff] }
  0x39   : > { %v762_v57 = vrot.slane %v748_v49, %v7711_v21  ;;  %v721_v58 = vrot.slane %v689_v50, %v7702_v16  ;;  %v735_v59 = vmul.f32 %v7722_v29, %v709_v13  ;;  %v736_v61 = vmul.f32 %v7722_v29, %v713_v51  ;;  %6795 = vmatprep.mubr.msk.f32.mxu0 %vm625_vm2, %v7910_v48  ;;  %v7994_v36 = vld [vmem:[#allocation2 + $0x88] sm:$0xff]  ;;  %v8023_v38 = vld [vmem:[#allocation2 + $0xb0] sm:$0xff]  ;;  %v6143_v13 = vld [vmem:[%s8814_s3 + $0x4] sm:$0xf] }
  0x3a   : > { %v934_v63 = vcombine.low %v926_v43, %v933_v53  ;;  %v737_v0 = vmul.f32 %v7722_v29, %v717_v55  ;;  %992 = vst.msk [vmem:[#allocation3 + $0x10] sm:$0xff] %vm625_vm2, %v988_v56  ;;  %v989_v2 = vmul.f32 %v985_v46, %v7722_v29  ;;  %v990_v3 = vmul.f32 %v986_v52, %v7722_v29  ;;  %v8044_v44 = vld [vmem:[#allocation2 + $0x49] sm:$0xff]  ;;  %v8052_v46 = vld [vmem:[#allocation2 + $0x51] sm:$0xff] }
  0x3b   : > { %v763_v4 = vcombine.low %v755_v54, %v762_v57  ;;  %v738_v16 = vmul.f32 %v7722_v29, %v721_v58  ;;  %v764_v5 = vcombine.low %v735_v59, %v736_v61  ;;  %v1004_v34 = vmul.f32 %v1000_v32, %v7720_v28  ;;  %v8056_v50 = vld [vmem:[#allocation2 + $0x69] sm:$0xff]  ;;  %v8074_v53 = vld [vmem:[#allocation2 + $0x71] sm:$0xff] }
  0x3c   : > { %v7935_v9 = vld [vmem:[#allocation2 + $0xc7] sm:$0xff]  ;;  %939 = vst.msk [vmem:[#allocation2 + $0xd0] sm:$0xff] %vm625_vm2, %v934_v63  ;;  %941 = vst.msk [vmem:[#allocation2 + $0xf0] sm:$0xff] %vm625_vm2, %v934_v63  ;;  %6796 = vmatmul.mubr.msk.f32.gmra.mrb[6].mxu0 %vm625_vm2, %v7928_v62  ;;  %v1005_v37 = vmul.f32 %v1001_v35, %v7720_v28  ;;  %v8089_v55 = vld [vmem:[#allocation2 + $0x91] sm:$0xff] }
  0x3d   : > { %993 = vst.msk [vmem:[#allocation3 + $0x28] sm:$0xff] %vm625_vm2, %v989_v2  ;;  %994 = vst.msk [vmem:[#allocation3 + $0x30] sm:$0xff] %vm625_vm2, %v990_v3  ;;  %v765_v29 = vcombine.low %v737_v0, %v738_v16  ;;  %v772_v11 = vrot.slane %v764_v5, %v7711_v21  ;;  %6798 = vmatprep.mubr.msk.f32.mxu0 %vm625_vm2, %v7935_v9  ;;  %v2156_v17 = vld [vmem:[#allocation2 + $0xe7] sm:$0xff]  ;;  %v8101_v57 = vld [vmem:[#allocation2 + $0xb1] sm:$0xff] }
  0x3e   : > { %783 = vst.msk [vmem:[#allocation2 + $0x8] sm:$0xff] %vm625_vm2, %v763_v4  ;;  %785 = vst.msk [vmem:[#allocation2 + $0x28] sm:$0xff] %vm625_vm2, %v763_v4  ;;  %v8025_v39 = vld [vmem:[#allocation2 + $0xc8] sm:$0xff] }
  0x3f   : > { %v779_v12 = vrot.slane %v765_v29, %v7711_v21  ;;  %v7958_v21 = vld [vmem:[#allocation2 + $0x48] sm:$0xff]  ;;  %1009 = vst.msk [vmem:[#allocation3 + $0xc8] sm:$0xff] %vm625_vm2, %v1004_v34  ;;  %1010 = vst.msk [vmem:[#allocation3 + $0xd0] sm:$0xff] %vm625_vm2, %v1005_v37 }
  0x40   : > { %v2346_v41 = vld [vmem:[#allocation2 + $0xe8] sm:$0xff] }
  0x41   : > { %v780_v14 = vcombine.low %v772_v11, %v779_v12  ;;  %v6046_v52 = vld [vmem:[%s8813_s2 + $0xc] sm:$0xf]  ;;  %v6157_v29 = vld [vmem:[%s8814_s3 + $0x8] sm:$0xf]  ;;  %v6060_v12 = vld [vmem:[%s8813_s2 + $0x10] sm:$0xf] }
  0x42   : > { %v8076_v54 = vld [vmem:[#allocation2 + $0x89] sm:$0xff] }
  0x43   : > { %v7949_v18 = vld [vmem:[#allocation2 + $0xcf] sm:$0xff]  ;;  %784 = vst.msk [vmem:[#allocation2 + $0x10] sm:$0xff] %vm625_vm2, %v780_v14  ;;  %786 = vst.msk [vmem:[#allocation2 + $0x30] sm:$0xff] %vm625_vm2, %v780_v14  ;;  %v2716_v2 = vld [vmem:[#allocation3 + $0x7] sm:$0xff] }
  0x44   : > { %6799 = vmatmul.mubr.msk.f32.gmra.mrb[8].mxu0 %vm625_vm2, %v7949_v18  ;;  %v2157_v20 = vld [vmem:[#allocation2 + $0xef] sm:$0xff]  ;;  %v8129_v5 = vld [vmem:[#allocation3 + $0x27] sm:$0xff] }
  0x45   : > { %v1042_v19 = vld [vmem:[#allocation2 + $0x8] sm:$0xff]  ;;  %6801 = vmatprep.mubr.msk.f32.mxu0 %vm625_vm2, %v2156_v17  ;;  %v8035_v40 = vld [vmem:[#allocation2 + $0xd0] sm:$0xff] }
  0x46   : > { %6666 = vmatprep.mubr.msk.f32.mxu1 %vm625_vm2, %v1042_v19  ;;  %v7965_v24 = vld [vmem:[#allocation2 + $0x28] sm:$0xff]  ;;  %v2347_v42 = vld [vmem:[#allocation2 + $0xf0] sm:$0xff] }
  0x47   : > { %v1029_v43 = vld [vmem:[#allocation2 + $0x7] sm:$0xff]  ;;  %v8113_v59 = vld [vmem:[#allocation2 + $0xd1] sm:$0xff] }
  0x48   : > { %6802 = vmatmul.mubr.msk.f32.gmra.mrb[10].mxu0 %vm625_vm2, %v2157_v20  ;;  %v8054_v49 = vld [vmem:[#allocation2 + $0x27] sm:$0xff]  ;;  %v2537_v63 = vld [vmem:[#allocation2 + $0xf1] sm:$0xff] }
  0x49   : > { %6806 = vmatprep.mubr.msk.f32.mxu0 %vm625_vm2, %v7958_v21  ;;  %v8091_v56 = vld [vmem:[#allocation2 + $0xa9] sm:$0xff] }
  0x4a   : > { %v1043_v25 = vld [vmem:[#allocation2 + $0x10] sm:$0xff]  ;;  %v8148_v17 = vld [vmem:[#allocation3 + $0x47] sm:$0xff] }
  0x4b   : > { %6667 = vmatmul.mubr.msk.f32.vlgmr.msra.gmra.mrb[0].mxu1 %vm625_vm2, %v1043_v25  ;;  %v7980_v31 = vld [vmem:[#allocation2 + $0x30] sm:$0xff]  ;;  %v8163_v20 = vld [vmem:[#allocation3 + $0x67] sm:$0xff] }
  0x4c   : > { %6807 = vmatmul.mubr.msk.f32.vlgmr.msra.gmra.mrb[0].mxu0 %vm625_vm2, %v7963_v23  ;;  %6669 = vmatprep.mubr.msk.f32.mxu1 %vm625_vm2, %v7965_v24  ;;  %v1030_v45 = vld [vmem:[#allocation2 + $0xf] sm:$0xff]  ;;  %v8187_v32 = vld [vmem:[#allocation3 + $0xa7] sm:$0xff] }
  0x4d   : > { %6825 = vmatpush3.msk.msra.mxu0 %vm1092_vm0, %v7868_v15  ;;  %6809 = vmatprep.mubr.msk.f32.mxu0 %vm625_vm2, %v7967_v26  ;;  %v8013_v15 = vld [vmem:[#allocation2 + $0xa8] sm:$0xff]  ;;  %v1386_v3 = vld [vmem:[#allocation2 + $0x11] sm:$0xff] }
  0x4e   : > { %6685 = vmatpush3.msk.msra.mxu1 %vm1092_vm0, %v7683_v10  ;;  %6844 = vmatprep.subr.msk.mxu0 %vm1092_vm0, %v2728_v30  ;;  %v8011_v10 = vld [vmem:[#allocation2 + $0x90] sm:$0xff]  ;;  %v2905_v35 = vld [vmem:[#allocation3 + $0x8] sm:$0xff] }
  0x4f   : > { %6670 = vmatmul.mubr.msk.f32.gmra.mrb[2].mxu1 %vm625_vm2, %v7980_v31  ;;  %6704 = vmatprep.subr.msk.mxu1 %vm1092_vm0, %v6032_v8  ;;  %v8066_v51 = vld [vmem:[#allocation2 + $0x2f] sm:$0xff] }
  0x50   : > { %6810 = vmatmul.mubr.msk.f32.gmra.mrb[2].mxu0 %vm625_vm2, %v7990_v33  ;;  %6672 = vmatprep.mubr.msk.f32.mxu1 %vm625_vm2, %v7958_v21  ;;  %v8103_v58 = vld [vmem:[#allocation2 + $0xc9] sm:$0xff]  ;;  %v8138_v11 = vld [vmem:[#allocation2 + $0x31] sm:$0xff] }
  0x51   : > { %6812 = vmatprep.mubr.msk.f32.mxu0 %vm625_vm2, %v7994_v36  ;;  %v2536_v61 = vld [vmem:[#allocation2 + $0xe9] sm:$0xff] }
  0x52   : > { %v1385_v0 = vld [vmem:[#allocation2 + $0x9] sm:$0xff] }
  0x53   : > { %6673 = vmatmul.mubr.msk.f32.gmra.mrb[4].mxu1 %vm625_vm2, %v7963_v23  ;;  %v2717_v4 = vld [vmem:[#allocation3 + $0xf] sm:$0xff] }
  0x54   : > { %6813 = vmatmul.mubr.msk.f32.gmra.mrb[4].mxu0 %vm625_vm2, %v8011_v10  ;;  %6675 = vmatprep.mubr.msk.f32.mxu1 %vm625_vm2, %v7967_v26  ;;  %v8127_v16 = vld [vmem:[#allocation2 + $0x29] sm:$0xff] }
  0x55   : > { %6815 = vmatprep.mubr.msk.f32.mxu0 %vm625_vm2, %v8013_v15  ;;  %v8146_v14 = vld [vmem:[#allocation3 + $0x2f] sm:$0xff] }
  0x56   : > { %v8161_v19 = vld [vmem:[#allocation3 + $0x4f] sm:$0xff] }
  0x57   : > { %6676 = vmatmul.mubr.msk.f32.gmra.mrb[6].mxu1 %vm625_vm2, %v7990_v33  ;;  %v8173_v25 = vld [vmem:[#allocation3 + $0x6f] sm:$0xff] }
  0x58   : > { %6816 = vmatmul.mubr.msk.f32.gmra.mrb[6].mxu0 %vm625_vm2, %v8023_v38  ;;  %6678 = vmatprep.mubr.msk.f32.mxu1 %vm625_vm2, %v7994_v36  ;;  %v8197_v34 = vld [vmem:[#allocation3 + $0xaf] sm:$0xff] }
  0x59   : > { %6818 = vmatprep.mubr.msk.f32.mxu0 %vm625_vm2, %v8025_v39  ;;  %v2906_v37 = vld [vmem:[#allocation3 + $0x10] sm:$0xff] }
  0x5b   : > { %6679 = vmatmul.mubr.msk.f32.gmra.mrb[8].mxu1 %vm625_vm2, %v8011_v10 }
  0x5c   : > { %6819 = vmatmul.mubr.msk.f32.gmra.mrb[8].mxu0 %vm625_vm2, %v8035_v40  ;;  %6681 = vmatprep.mubr.msk.f32.mxu1 %vm625_vm2, %v8013_v15 }
  0x5d   : > { %6821 = vmatprep.mubr.msk.f32.mxu0 %vm625_vm2, %v2346_v41  ;;  %v8206_v41 = vld [vmem:[#allocation3 + $0x28] sm:$0xff] }
  0x5f   : > { %6682 = vmatmul.mubr.msk.f32.gmra.mrb[10].mxu1 %vm625_vm2, %v8023_v38 }
  0x60   : > { %6822 = vmatmul.mubr.msk.f32.gmra.mrb[10].mxu0 %vm625_vm2, %v2347_v42  ;;  %6686 = vmatprep.mubr.msk.f32.mxu1 %vm625_vm2, %v1029_v43  ;;  %v6171_v42 = vld [vmem:[%s8814_s3 + $0xc] sm:$0xf]  ;;  %v6074_v43 = vld [vmem:[%s8813_s2 + $0x14] sm:$0xf] }
  0x61   : > { %6826 = vmatprep.mubr.msk.f32.mxu0 %vm625_vm2, %v8044_v44 }
  0x63   : > { %6687 = vmatmul.mubr.msk.f32.vlgmr.msra.gmra.mrb[0].mxu1 %vm625_vm2, %v1030_v45  ;;  %v1002_v45 = vld [vmem:[%s7974_s22 + $0x10] sm:$0xff] }
  0x64   : > { %6827 = vmatmul.mubr.msk.f32.vlgmr.msra.gmra.mrb[0].mxu0 %vm625_vm2, %v8052_v46  ;;  %6689 = vmatprep.mubr.msk.f32.mxu1 %vm625_vm2, %v8054_v49 }
  0x65   : > { %6845 = vmatpush3.msk.msra.mxu0 %vm1092_vm0, %v2728_v30  ;;  %6829 = vmatprep.mubr.msk.f32.mxu0 %vm625_vm2, %v8056_v50  ;;  %v8175_v30 = vld [vmem:[#allocation3 + $0x87] sm:$0xff] }
  0x66   : > { %6705 = vmatpush3.msk.msra.mxu1 %vm1092_vm0, %v6032_v8  ;;  %6864 = vmatprep.subr.msk.mxu0 %vm1092_vm0, %v6143_v13  ;;  %v8185_v8 = vld [vmem:[#allocation3 + $0x8f] sm:$0xff] }
  0x67   : > { %6690 = vmatmul.mubr.msk.f32.gmra.mrb[2].mxu1 %vm625_vm2, %v8066_v51  ;;  %6724 = vmatprep.subr.msk.mxu1 %vm1092_vm0, %v6046_v52 }
  0x68   : > { %6830 = vmatmul.mubr.msk.f32.gmra.mrb[2].mxu0 %vm625_vm2, %v8074_v53  ;;  %6692 = vmatprep.mubr.msk.f32.mxu1 %vm625_vm2, %v7845_v60 }
  0x69   : > { %6832 = vmatprep.mubr.msk.f32.mxu0 %vm625_vm2, %v8076_v54 }
  0x6b   : > { %6693 = vmatmul.mubr.msk.f32.gmra.mrb[4].mxu1 %vm625_vm2, %v7858_v6 }
  0x6c   : > { %6833 = vmatmul.mubr.msk.f32.gmra.mrb[4].mxu0 %vm625_vm2, %v8089_v55  ;;  %6695 = vmatprep.mubr.msk.f32.mxu1 %vm625_vm2, %v7851_v1 }
  0x6d   : > { %6835 = vmatprep.mubr.msk.f32.mxu0 %vm625_vm2, %v8091_v56 }
  0x6f   : > { %6696 = vmatmul.mubr.msk.f32.gmra.mrb[6].mxu1 %vm625_vm2, %v7879_v22 }
  0x70   : > { %6836 = vmatmul.mubr.msk.f32.gmra.mrb[6].mxu0 %vm625_vm2, %v8101_v57  ;;  %6698 = vmatprep.mubr.msk.f32.mxu1 %vm625_vm2, %v7885_v27 }
  0x71   : > { %6838 = vmatprep.mubr.msk.f32.mxu0 %vm625_vm2, %v8103_v58 }
  0x73   : > { %6699 = vmatmul.mubr.msk.f32.gmra.mrb[8].mxu1 %vm625_vm2, %v7908_v47 }
  0x74   : > { %6839 = vmatmul.mubr.msk.f32.gmra.mrb[8].mxu0 %vm625_vm2, %v8113_v59  ;;  %6701 = vmatprep.mubr.msk.f32.mxu1 %vm625_vm2, %v7910_v48 }
  0x75   : > { %6841 = vmatprep.mubr.msk.f32.mxu0 %vm625_vm2, %v2536_v61  ;;  %v8243_v61 = vld [vmem:[#allocation3 + $0x50] sm:$0xff] }
  0x77   : > { %6702 = vmatmul.mubr.msk.f32.gmra.mrb[10].mxu1 %vm625_vm2, %v7928_v62 }
  0x78   : > { %6842 = vmatmul.mubr.msk.f32.gmra.mrb[10].mxu0 %vm625_vm2, %v2537_v63  ;;  %6706 = vmatprep.mubr.msk.f32.mxu1 %vm625_vm2, %v1385_v0  ;;  %v8288_v63 = vld [vmem:[#allocation3 + $0x29] sm:$0xff] }
  0x79   : > { %6846 = vmatprep.mubr.msk.f32.mxu0 %vm625_vm2, %v2716_v2 }
  0x7b   : > { %6707 = vmatmul.mubr.msk.f32.vlgmr.msra.gmra.mrb[0].mxu1 %vm625_vm2, %v1386_v3 }
  0x7c   : > { %6847 = vmatmul.mubr.msk.f32.vlgmr.msra.gmra.mrb[0].mxu0 %vm625_vm2, %v2717_v4  ;;  %6709 = vmatprep.mubr.msk.f32.mxu1 %vm625_vm2, %v8127_v16 }
  0x7d   : > { %6865 = vmatpush3.msk.msra.mxu0 %vm1092_vm0, %v6143_v13  ;;  %6849 = vmatprep.mubr.msk.f32.mxu0 %vm625_vm2, %v8129_v5  ;;  %v1006_v13 = vmul.f32 %v1002_v45, %v7720_v28 }
  0x7e   : > { %6725 = vmatpush3.msk.msra.mxu1 %vm1092_vm0, %v6046_v52  ;;  %6884 = vmatprep.subr.msk.mxu0 %vm1092_vm0, %v6157_v29  ;;  %v8227_v52 = vld [vmem:[#allocation3 + $0x48] sm:$0xff] }
  0x7f   : > { %6710 = vmatmul.mubr.msk.f32.gmra.mrb[2].mxu1 %vm625_vm2, %v8138_v11  ;;  %6744 = vmatprep.subr.msk.mxu1 %vm1092_vm0, %v6060_v12  ;;  %1011 = vst.msk [vmem:[#allocation3 + $0xe8] sm:$0xff] %vm625_vm2, %v1006_v13 }
  0x80   : > { %6850 = vmatmul.mubr.msk.f32.gmra.mrb[2].mxu0 %vm625_vm2, %v8146_v14  ;;  %6712 = vmatprep.mubr.msk.f32.mxu1 %vm625_vm2, %v8044_v44 }
  0x81   : > { %6852 = vmatprep.mubr.msk.f32.mxu0 %vm625_vm2, %v8148_v17 }
  0x83   : > { %6713 = vmatmul.mubr.msk.f32.gmra.mrb[4].mxu1 %vm625_vm2, %v8052_v46 }
  0x84   : > { %6853 = vmatmul.mubr.msk.f32.gmra.mrb[4].mxu0 %vm625_vm2, %v8161_v19  ;;  %6715 = vmatprep.mubr.msk.f32.mxu1 %vm625_vm2, %v8056_v50 }
  0x85   : > { %6855 = vmatprep.mubr.msk.f32.mxu0 %vm625_vm2, %v8163_v20 }
  0x87   : > { %6716 = vmatmul.mubr.msk.f32.gmra.mrb[6].mxu1 %vm625_vm2, %v8074_v53 }
  0x88   : > { %6856 = vmatmul.mubr.msk.f32.gmra.mrb[6].mxu0 %vm625_vm2, %v8173_v25  ;;  %6718 = vmatprep.mubr.msk.f32.mxu1 %vm625_vm2, %v8076_v54 }
  0x89   : > { %6858 = vmatprep.mubr.msk.f32.mxu0 %vm625_vm2, %v8175_v30 }
  0x8b   : > { %6719 = vmatmul.mubr.msk.f32.gmra.mrb[8].mxu1 %vm625_vm2, %v8089_v55 }
  0x8c   : > { %6859 = vmatmul.mubr.msk.f32.gmra.mrb[8].mxu0 %vm625_vm2, %v8185_v8  ;;  %6721 = vmatprep.mubr.msk.f32.mxu1 %vm625_vm2, %v8091_v56 }
  0x8d   : > { %6861 = vmatprep.mubr.msk.f32.mxu0 %vm625_vm2, %v8187_v32 }
  0x8f   : > { %6722 = vmatmul.mubr.msk.f32.gmra.mrb[10].mxu1 %vm625_vm2, %v8101_v57 }
  0x90   : > { %6862 = vmatmul.mubr.msk.f32.gmra.mrb[10].mxu0 %vm625_vm2, %v8197_v34  ;;  %6726 = vmatprep.mubr.msk.f32.mxu1 %vm625_vm2, %v8054_v49  ;;  %v8223_v49 = vld [vmem:[#allocation3 + $0x30] sm:$0xff] }
  0x91   : > { %6866 = vmatprep.mubr.msk.f32.mxu0 %vm625_vm2, %v2905_v35  ;;  %v8538_v35 = vld [vmem:[%s8817_s6] ss:$0 sm:$0xff] }
  0x93   : > { %6727 = vmatmul.mubr.msk.f32.vlgmr.msra.gmra.mrb[0].mxu1 %vm625_vm2, %v8066_v51  ;;  %v1003_v51 = vld [vmem:[%s7974_s22 + $0x18] sm:$0xff] }
  0x94   : > { %6867 = vmatmul.mubr.msk.f32.vlgmr.msra.gmra.mrb[0].mxu0 %vm625_vm2, %v2906_v37  ;;  %6729 = vmatprep.mubr.msk.f32.mxu1 %vm625_vm2, %v7845_v60  ;;  %v1007_v60 = vmul.f32 %v1003_v51, %v7720_v28  ;;  %v8245_v28 = vld [vmem:[#allocation3 + $0x68] sm:$0xff] }
  0x95   : > { %6885 = vmatpush3.msk.msra.mxu0 %vm1092_vm0, %v6157_v29  ;;  %6869 = vmatprep.mubr.msk.f32.mxu0 %vm625_vm2, %v8206_v41 }
  0x96   : > { %6745 = vmatpush3.msk.msra.mxu1 %vm1092_vm0, %v6060_v12  ;;  %6904 = vmatprep.subr.msk.mxu0 %vm1092_vm0, %v6171_v42  ;;  %1012 = vst.msk [vmem:[#allocation3 + $0xf0] sm:$0xff] %vm625_vm2, %v1007_v60 }
  0x97   : > { %6730 = vmatmul.mubr.msk.f32.gmra.mrb[2].mxu1 %vm625_vm2, %v7858_v6  ;;  %6764 = vmatprep.subr.msk.mxu1 %vm1092_vm0, %v6074_v43  ;;  %v8257_v6 = vld [vmem:[#allocation3 + $0x88] sm:$0xff] }
  0x98   : > { %6870 = vmatmul.mubr.msk.f32.gmra.mrb[2].mxu0 %vm625_vm2, %v8223_v49  ;;  %6732 = vmatprep.mubr.msk.f32.mxu1 %vm625_vm2, %v7851_v1  ;;  %v8255_v1 = vld [vmem:[#allocation3 + $0x70] sm:$0xff] }
  0x99   : > { %6872 = vmatprep.mubr.msk.f32.mxu0 %vm625_vm2, %v8227_v52 }
  0x9b   : > { %6733 = vmatmul.mubr.msk.f32.gmra.mrb[4].mxu1 %vm625_vm2, %v7879_v22  ;;  %v8267_v22 = vld [vmem:[#allocation3 + $0x90] sm:$0xff] }
  0x9c   : > { %6873 = vmatmul.mubr.msk.f32.gmra.mrb[4].mxu0 %vm625_vm2, %v8243_v61  ;;  %6735 = vmatprep.mubr.msk.f32.mxu1 %vm625_vm2, %v7885_v27  ;;  %v8269_v27 = vld [vmem:[#allocation3 + $0xa8] sm:$0xff] }
  0x9d   : > { %6875 = vmatprep.mubr.msk.f32.mxu0 %vm625_vm2, %v8245_v28  ;;  %v4246_v0 = vld [vmem:[#allocation3 + $0xe9] sm:$0xff]  ;;  %v4247_v2 = vld [vmem:[#allocation3 + $0xf1] sm:$0xff] }
  0x9f   : > { %6736 = vmatmul.mubr.msk.f32.gmra.mrb[6].mxu1 %vm625_vm2, %v7908_v47  ;;  %v8279_v47 = vld [vmem:[#allocation3 + $0xb0] sm:$0xff] }
  0xa0   : > { %6876 = vmatmul.mubr.msk.f32.gmra.mrb[6].mxu0 %vm625_vm2, %v8255_v1  ;;  %6738 = vmatprep.mubr.msk.f32.mxu1 %vm625_vm2, %v7910_v48  ;;  %v3095_v48 = vld [vmem:[#allocation3 + $0x9] sm:$0xff] }
  0xa1   : > { %6878 = vmatprep.mubr.msk.f32.mxu0 %vm625_vm2, %v8257_v6 }
  0xa3   : > { %6739 = vmatmul.mubr.msk.f32.gmra.mrb[8].mxu1 %vm625_vm2, %v7928_v62  ;;  %v3096_v62 = vld [vmem:[#allocation3 + $0x11] sm:$0xff] }
  0xa4   : > { %6879 = vmatmul.mubr.msk.f32.gmra.mrb[8].mxu0 %vm625_vm2, %v8267_v22  ;;  %6741 = vmatprep.mubr.msk.f32.mxu1 %vm625_vm2, %v7935_v9  ;;  %v6185_v9 = vld [vmem:[%s8814_s3 + $0x10] sm:$0xf] }
  0xa5   : > { %6881 = vmatprep.mubr.msk.f32.mxu0 %vm625_vm2, %v8269_v27 }
  0xa7   : > { %6742 = vmatmul.mubr.msk.f32.gmra.mrb[10].mxu1 %vm625_vm2, %v7949_v18  ;;  %v8301_v18 = vld [vmem:[#allocation3 + $0x31] sm:$0xff] }
  0xa8   : > { %6882 = vmatmul.mubr.msk.f32.gmra.mrb[10].mxu0 %vm625_vm2, %v8279_v47  ;;  %6746 = vmatprep.mubr.msk.f32.mxu1 %vm625_vm2, %v7965_v24  ;;  %v8303_v24 = vld [vmem:[#allocation3 + $0x49] sm:$0xff] }
  0xa9   : > { %6886 = vmatprep.mubr.msk.f32.mxu0 %vm625_vm2, %v3095_v48 }
  0xab   : > { %6747 = vmatmul.mubr.msk.f32.vlgmr.msra.gmra.mrb[0].mxu1 %vm625_vm2, %v7980_v31  ;;  %v8317_v31 = vld [vmem:[#allocation3 + $0x69] sm:$0xff] }
  0xac   : > { %6887 = vmatmul.mubr.msk.f32.vlgmr.msra.gmra.mrb[0].mxu0 %vm625_vm2, %v3096_v62  ;;  %6749 = vmatprep.mubr.msk.f32.mxu1 %vm625_vm2, %v7958_v21  ;;  %v8315_v21 = vld [vmem:[#allocation3 + $0x51] sm:$0xff] }
  0xad   : > { %6905 = vmatpush3.msk.msra.mxu0 %vm1092_vm0, %v6171_v42  ;;  %6889 = vmatprep.mubr.msk.f32.mxu0 %vm625_vm2, %v8288_v63 }
  0xae   : > { %6765 = vmatpush3.msk.msra.mxu1 %vm1092_vm0, %v6074_v43  ;;  %6924 = vmatprep.subr.msk.mxu0 %vm1092_vm0, %v6185_v9 }
  0xaf   : > { %6750 = vmatmul.mubr.msk.f32.gmra.mrb[2].mxu1 %vm625_vm2, %v7963_v23  ;;  %v8327_v23 = vld [vmem:[#allocation3 + $0x71] sm:$0xff] }
  0xb0   : > { %6890 = vmatmul.mubr.msk.f32.gmra.mrb[2].mxu0 %vm625_vm2, %v8301_v18  ;;  %6752 = vmatprep.mubr.msk.f32.mxu1 %vm625_vm2, %v7967_v26  ;;  %v8329_v26 = vld [vmem:[#allocation3 + $0x89] sm:$0xff] }
  0xb1   : > { %6892 = vmatprep.mubr.msk.f32.mxu0 %vm625_vm2, %v8303_v24 }
  0xb3   : > { %6753 = vmatmul.mubr.msk.f32.gmra.mrb[4].mxu1 %vm625_vm2, %v7990_v33  ;;  %v8339_v33 = vld [vmem:[#allocation3 + $0x91] sm:$0xff] }
  0xb4   : > { %6893 = vmatmul.mubr.msk.f32.gmra.mrb[4].mxu0 %vm625_vm2, %v8315_v21  ;;  %6755 = vmatprep.mubr.msk.f32.mxu1 %vm625_vm2, %v7994_v36  ;;  %v8341_v36 = vld [vmem:[#allocation3 + $0xa9] sm:$0xff] }
  0xb5   : > { %6895 = vmatprep.mubr.msk.f32.mxu0 %vm625_vm2, %v8317_v31 }
  0xb7   : > { %6756 = vmatmul.mubr.msk.f32.gmra.mrb[6].mxu1 %vm625_vm2, %v8011_v10  ;;  %v8351_v10 = vld [vmem:[#allocation3 + $0xb1] sm:$0xff] }
  0xb8   : > { %6896 = vmatmul.mubr.msk.f32.gmra.mrb[6].mxu0 %vm625_vm2, %v8327_v23  ;;  %6758 = vmatprep.mubr.msk.f32.mxu1 %vm625_vm2, %v8013_v15  ;;  %v6199_v15 = vld [vmem:[%s8814_s3 + $0x14] sm:$0xf] }
  0xb9   : > { %6898 = vmatprep.mubr.msk.f32.mxu0 %vm625_vm2, %v8329_v26 }
  0xbb   : > { %6759 = vmatmul.mubr.msk.f32.gmra.mrb[8].mxu1 %vm625_vm2, %v8023_v38  ;;  %v3296_v38 = vld [vmem:[#allocation3 + $0xc7] sm:$0xff] }
  0xbc   : > { %6899 = vmatmul.mubr.msk.f32.gmra.mrb[8].mxu0 %vm625_vm2, %v8339_v33  ;;  %6761 = vmatprep.mubr.msk.f32.mxu1 %vm625_vm2, %v8025_v39  ;;  %v3297_v39 = vld [vmem:[#allocation3 + $0xcf] sm:$0xff] }
  0xbd   : > { %6901 = vmatprep.mubr.msk.f32.mxu0 %vm625_vm2, %v8341_v36 }
  0xbf   : > { %6762 = vmatmul.mubr.msk.f32.gmra.mrb[10].mxu1 %vm625_vm2, %v8035_v40  ;;  %v6213_v40 = vld [vmem:[%s8814_s3 + $0x18] sm:$0xf] }
  0xc0   : > { %6902 = vmatmul.mubr.msk.f32.gmra.mrb[10].mxu0 %vm625_vm2, %v8351_v10  ;;  %6766 = vmatprep.mubr.msk.f32.mxu1 %vm625_vm2, %v8127_v16 }
  0xc1   : > { %6906 = vmatprep.mubr.msk.f32.mxu0 %vm625_vm2, %v8129_v5 }
  0xc3   : > { %6767 = vmatmul.mubr.msk.f32.vlgmr.msra.gmra.mrb[0].mxu1 %vm625_vm2, %v8138_v11 }
  0xc4   : > { %6907 = vmatmul.mubr.msk.f32.vlgmr.msra.gmra.mrb[0].mxu0 %vm625_vm2, %v8146_v14  ;;  %6769 = vmatprep.mubr.msk.f32.mxu1 %vm625_vm2, %v8044_v44  ;;  %v3486_v44 = vld [vmem:[#allocation3 + $0xc8] sm:$0xff] }
  0xc5   : > { %6925 = vmatpush3.msk.msra.mxu0 %vm1092_vm0, %v6185_v9  ;;  %6909 = vmatprep.mubr.msk.f32.mxu0 %vm625_vm2, %v8148_v17 }
  0xc6   : > { %6944 = vmatprep.subr.msk.mxu0 %vm1092_vm0, %v6199_v15 }
  0xc7   : > { %6770 = vmatmul.mubr.msk.f32.gmra.mrb[2].mxu1 %vm625_vm2, %v8052_v46  ;;  %v3487_v46 = vld [vmem:[#allocation3 + $0xd0] sm:$0xff] }
  0xc8   : > { %6910 = vmatmul.mubr.msk.f32.gmra.mrb[2].mxu0 %vm625_vm2, %v8161_v19  ;;  %6772 = vmatprep.mubr.msk.f32.mxu1 %vm625_vm2, %v8056_v50  ;;  %v6227_v50 = vld [vmem:[%s8814_s3 + $0x1c] sm:$0xf] }
  0xc9   : > { %6912 = vmatprep.mubr.msk.f32.mxu0 %vm625_vm2, %v8163_v20 }
  0xcb   : > { %6773 = vmatmul.mubr.msk.f32.gmra.mrb[4].mxu1 %vm625_vm2, %v8074_v53  ;;  %v3676_v53 = vld [vmem:[#allocation3 + $0xc9] sm:$0xff] }
  0xcc   : > { %6913 = vmatmul.mubr.msk.f32.gmra.mrb[4].mxu0 %vm625_vm2, %v8173_v25  ;;  %6775 = vmatprep.mubr.msk.f32.mxu1 %vm625_vm2, %v8076_v54  ;;  %v3677_v54 = vld [vmem:[#allocation3 + $0xd1] sm:$0xff] }
  0xcd   : > { %6915 = vmatprep.mubr.msk.f32.mxu0 %vm625_vm2, %v8175_v30 }
  0xcf   : > { %6776 = vmatmul.mubr.msk.f32.gmra.mrb[6].mxu1 %vm625_vm2, %v8089_v55  ;;  %v6241_v55 = vld [vmem:[%s8814_s3 + $0x20] sm:$0xf] }
  0xd0   : > { %6916 = vmatmul.mubr.msk.f32.gmra.mrb[6].mxu0 %vm625_vm2, %v8185_v8  ;;  %6778 = vmatprep.mubr.msk.f32.mxu1 %vm625_vm2, %v8091_v56  ;;  %v3866_v56 = vld [vmem:[#allocation3 + $0xe7] sm:$0xff] }
  0xd1   : > { %6918 = vmatprep.mubr.msk.f32.mxu0 %vm625_vm2, %v8187_v32 }
  0xd3   : > { %6779 = vmatmul.mubr.msk.f32.gmra.mrb[8].mxu1 %vm625_vm2, %v8101_v57  ;;  %v3867_v57 = vld [vmem:[#allocation3 + $0xef] sm:$0xff] }
  0xd4   : > { %6919 = vmatmul.mubr.msk.f32.gmra.mrb[8].mxu0 %vm625_vm2, %v8197_v34  ;;  %6781 = vmatprep.mubr.msk.f32.mxu1 %vm625_vm2, %v8103_v58  ;;  %v4056_v58 = vld [vmem:[#allocation3 + $0xe8] sm:$0xff] }
  0xd5   : > { %6921 = vmatprep.mubr.msk.f32.mxu0 %vm625_vm2, %v3296_v38 }
  0xd7   : > { %6782 = vmatmul.mubr.msk.f32.gmra.mrb[10].mxu1 %vm625_vm2, %v8113_v59  ;;  %v4057_v59 = vld [vmem:[#allocation3 + $0xf0] sm:$0xff] }
  0xd8   : > { %6922 = vmatmul.mubr.msk.f32.gmra.mrb[10].mxu0 %vm625_vm2, %v3297_v39 }
  0xd9   : > { %6926 = vmatprep.mubr.msk.f32.mxu0 %vm625_vm2, %v8206_v41 }
  0xdc   : > { %6927 = vmatmul.mubr.msk.f32.vlgmr.msra.gmra.mrb[0].mxu0 %vm625_vm2, %v8223_v49 }
  0xdd   : > { %6945 = vmatpush3.msk.msra.mxu0 %vm1092_vm0, %v6199_v15  ;;  %6929 = vmatprep.mubr.msk.f32.mxu0 %vm625_vm2, %v8227_v52 }
  0xde   : > { %6964 = vmatprep.subr.msk.mxu0 %vm1092_vm0, %v6213_v40 }
  0xe0   : > { %6930 = vmatmul.mubr.msk.f32.gmra.mrb[2].mxu0 %vm625_vm2, %v8243_v61 }
  0xe1   : > { %6932 = vmatprep.mubr.msk.f32.mxu0 %vm625_vm2, %v8245_v28 }
  0xe4   : > { %6933 = vmatmul.mubr.msk.f32.gmra.mrb[4].mxu0 %vm625_vm2, %v8255_v1 }
  0xe5   : > { %6935 = vmatprep.mubr.msk.f32.mxu0 %vm625_vm2, %v8257_v6 }
  0xe8   : > { %6936 = vmatmul.mubr.msk.f32.gmra.mrb[6].mxu0 %vm625_vm2, %v8267_v22 }
  0xe9   : > { %6938 = vmatprep.mubr.msk.f32.mxu0 %vm625_vm2, %v8269_v27 }
  0xec   : > { %6939 = vmatmul.mubr.msk.f32.gmra.mrb[8].mxu0 %vm625_vm2, %v8279_v47 }
  0xed   : > { %6941 = vmatprep.mubr.msk.f32.mxu0 %vm625_vm2, %v3486_v44 }
  0xf0   : > { %6942 = vmatmul.mubr.msk.f32.gmra.mrb[10].mxu0 %vm625_vm2, %v3487_v46 }
  0xf1   : > { %6946 = vmatprep.mubr.msk.f32.mxu0 %vm625_vm2, %v8288_v63 }
  0xf4   : > { %6947 = vmatmul.mubr.msk.f32.vlgmr.msra.gmra.mrb[0].mxu0 %vm625_vm2, %v8301_v18 }
  0xf5   : > { %6965 = vmatpush3.msk.msra.mxu0 %vm1092_vm0, %v6213_v40  ;;  %6949 = vmatprep.mubr.msk.f32.mxu0 %vm625_vm2, %v8303_v24 }
  0xf6   : > { %6984 = vmatprep.subr.msk.mxu0 %vm1092_vm0, %v6227_v50 }
  0xf8   : > { %6950 = vmatmul.mubr.msk.f32.gmra.mrb[2].mxu0 %vm625_vm2, %v8315_v21 }
  0xf9   : > { %6952 = vmatprep.mubr.msk.f32.mxu0 %vm625_vm2, %v8317_v31 }
  0xfc   : > { %6953 = vmatmul.mubr.msk.f32.gmra.mrb[4].mxu0 %vm625_vm2, %v8327_v23 }
  0xfd   : > { %6955 = vmatprep.mubr.msk.f32.mxu0 %vm625_vm2, %v8329_v26 }
 0x100   : > { %6956 = vmatmul.mubr.msk.f32.gmra.mrb[6].mxu0 %vm625_vm2, %v8339_v33 }
 0x101   : > { %6958 = vmatprep.mubr.msk.f32.mxu0 %vm625_vm2, %v8341_v36 }
 0x104   : > { %6959 = vmatmul.mubr.msk.f32.gmra.mrb[8].mxu0 %vm625_vm2, %v8351_v10 }
 0x105   : > { %6961 = vmatprep.mubr.msk.f32.mxu0 %vm625_vm2, %v3676_v53 }
 0x108   : > { %6962 = vmatmul.mubr.msk.f32.gmra.mrb[10].mxu0 %vm625_vm2, %v3677_v54 }
 0x109   : > { %6966 = vmatprep.mubr.msk.f32.mxu0 %vm625_vm2, %v8148_v17 }
 0x10c   : > { %6967 = vmatmul.mubr.msk.f32.vlgmr.msra.gmra.mrb[0].mxu0 %vm625_vm2, %v8161_v19 }
 0x10d   : > { %6985 = vmatpush3.msk.msra.mxu0 %vm1092_vm0, %v6227_v50  ;;  %6969 = vmatprep.mubr.msk.f32.mxu0 %vm625_vm2, %v8163_v20 }
 0x10e   : > { %7004 = vmatprep.subr.msk.mxu0 %vm1092_vm0, %v6241_v55 }
 0x110   : > { %6970 = vmatmul.mubr.msk.f32.gmra.mrb[2].mxu0 %vm625_vm2, %v8173_v25 }
 0x111   : > { %6972 = vmatprep.mubr.msk.f32.mxu0 %vm625_vm2, %v8175_v30 }
 0x114   : > { %6973 = vmatmul.mubr.msk.f32.gmra.mrb[4].mxu0 %vm625_vm2, %v8185_v8  ;;  %v8533_v8 = vld [vmem:[%s8816_s5] ss:$0 sm:$0xff] }
 0x115   : > { %6975 = vmatprep.mubr.msk.f32.mxu0 %vm625_vm2, %v8187_v32 }
 0x118   : > { %6976 = vmatmul.mubr.msk.f32.gmra.mrb[6].mxu0 %vm625_vm2, %v8197_v34 }
 0x119   : > { %6978 = vmatprep.mubr.msk.f32.mxu0 %vm625_vm2, %v3296_v38 }
 0x11c   : > { %6979 = vmatmul.mubr.msk.f32.gmra.mrb[8].mxu0 %vm625_vm2, %v3297_v39 }
 0x11d   : > { %6981 = vmatprep.mubr.msk.f32.mxu0 %vm625_vm2, %v3866_v56 }
 0x120   : > { %6982 = vmatmul.mubr.msk.f32.gmra.mrb[10].mxu0 %vm625_vm2, %v3867_v57 }
 0x121   : > { %6986 = vmatprep.mubr.msk.f32.mxu0 %vm625_vm2, %v8227_v52 }
 0x124   : > { %6987 = vmatmul.mubr.msk.f32.vlgmr.msra.gmra.mrb[0].mxu0 %vm625_vm2, %v8243_v61 }
 0x125   : > { %7005 = vmatpush3.msk.msra.mxu0 %vm1092_vm0, %v6241_v55  ;;  %6989 = vmatprep.mubr.msk.f32.mxu0 %vm625_vm2, %v8245_v28 }
 0x128   : > { %6990 = vmatmul.mubr.msk.f32.gmra.mrb[2].mxu0 %vm625_vm2, %v8255_v1 }
 0x129   : > { %6992 = vmatprep.mubr.msk.f32.mxu0 %vm625_vm2, %v8257_v6 }
 0x12c   : > { %6993 = vmatmul.mubr.msk.f32.gmra.mrb[4].mxu0 %vm625_vm2, %v8267_v22 }
 0x12d   : > { %6995 = vmatprep.mubr.msk.f32.mxu0 %vm625_vm2, %v8269_v27 }
 0x130   : > { %6996 = vmatmul.mubr.msk.f32.gmra.mrb[6].mxu0 %vm625_vm2, %v8279_v47 }
 0x131   : > { %6998 = vmatprep.mubr.msk.f32.mxu0 %vm625_vm2, %v3486_v44 }
 0x134   : > { %6999 = vmatmul.mubr.msk.f32.gmra.mrb[8].mxu0 %vm625_vm2, %v3487_v46 }
 0x135   : > { %7001 = vmatprep.mubr.msk.f32.mxu0 %vm625_vm2, %v4056_v58 }
 0x138   : > { %7002 = vmatmul.mubr.msk.f32.gmra.mrb[10].mxu0 %vm625_vm2, %v4057_v59 }
 0x139   : > { %7006 = vmatprep.mubr.msk.f32.mxu0 %vm625_vm2, %v8303_v24 }
 0x13c   : > { %7007 = vmatmul.mubr.msk.f32.vlgmr.msra.gmra.mrb[0].mxu0 %vm625_vm2, %v8315_v21 }
 0x13d   : > { %7009 = vmatprep.mubr.msk.f32.mxu0 %vm625_vm2, %v8317_v31 }
 0x140   : > { %7010 = vmatmul.mubr.msk.f32.gmra.mrb[2].mxu0 %vm625_vm2, %v8327_v23 }
 0x141   : > { %7012 = vmatprep.mubr.msk.f32.mxu0 %vm625_vm2, %v8329_v26 }
 0x144   : > { %7013 = vmatmul.mubr.msk.f32.gmra.mrb[4].mxu0 %vm625_vm2, %v8339_v33 }
 0x145   : > { %7015 = vmatprep.mubr.msk.f32.mxu0 %vm625_vm2, %v8341_v36 }
 0x148   : > { %7016 = vmatmul.mubr.msk.f32.gmra.mrb[6].mxu0 %vm625_vm2, %v8351_v10 }
 0x149   : > { %7018 = vmatprep.mubr.msk.f32.mxu0 %vm625_vm2, %v3676_v53 }
 0x14c   : > { %7019 = vmatmul.mubr.msk.f32.gmra.mrb[8].mxu0 %vm625_vm2, %v3677_v54 }
 0x14d   : > { %7021 = vmatprep.mubr.msk.f32.mxu0 %vm625_vm2, %v4246_v0 }
 0x150   : > { %7022 = vmatmul.mubr.msk.f32.gmra.mrb[10].mxu0 %vm625_vm2, %v4247_v2 }
 0x196   : > { %v6768_v3 = vpop.f32.mrb[0].mxu1 }
 0x197   : > { %v2075_v4 = vpop.f32.mrb[1].mxu1 }
 0x19a   : > { %v6771_v16 = vpop.f32.mrb[2].mxu1 }
 0x19b   : > { %v2085_v5 = vpop.f32.mrb[3].mxu1 }
 0x19e   : > { %v6774_v29 = vpop.f32.mrb[4].mxu1 }
 0x19f   : > { %v2095_v11 = vpop.f32.mrb[5].mxu1 }
 0x1a2   : > { %v6777_v12 = vpop.f32.mrb[6].mxu1 }
 0x1a3   : > { %v2105_v14 = vpop.f32.mrb[7].mxu1 }
 0x1a6   : > { %v6780_v17 = vpop.f32.mrb[8].mxu1 }
 0x1a7   : > { %v2115_v19 = vpop.f32.mrb[9].mxu1 }
 0x1aa   : > { %v6783_v20 = vpop.f32.mrb[10].mxu1 }
 0x1ab   : > { %v8528_v25 = vpop.f32.mrb[11].mxu1 }
 0x20f   : > { %v7008_v30 = vpop.f32.mrb[0].mxu0 }
 0x210   : > { %v7150_v32 = vadd.f32 %v7008_v30, %v6768_v3  ;;  %v4355_v34 = vpop.f32.mrb[1].mxu0 }
 0x211   : > { %v7151_v37 = vadd.f32 %v4355_v34, %v2075_v4 }
 0x212   : > { %v4434_v41 = vmul.f32 %v7150_v32, %v8533_v8 }
 0x213   : > { %v4433_v42 = vmul.f32 %v7151_v37, %v8533_v8  ;;  %v7011_v43 = vpop.f32.mrb[2].mxu0 }
 0x214   : > { %v4453_v45 = vadd.f32 %v8538_v35, %v4434_v41  ;;  %v7152_v49 = vadd.f32 %v7011_v43, %v6771_v16  ;;  %v4365_v13 = vpop.f32.mrb[3].mxu0 }
 0x215   : > { %v4452_v51 = vadd.f32 %v8538_v35, %v4433_v42  ;;  %v7153_v52 = vadd.f32 %v4365_v13, %v2085_v5 }
 0x216   : > { %v4465_v60 = vmax.f32 %v4453_v45, 0.0  ;;  %v4436_v61 = vmul.f32 %v7152_v49, %v8533_v8 }
 0x217   : > { %v4464_v28 = vmax.f32 %v4452_v51, 0.0  ;;  %v4435_v1 = vmul.f32 %v7153_v52, %v8533_v8  ;;  %v7014_v6 = vpop.f32.mrb[4].mxu0 }
 0x218   : > { %4478 = vst.msk [vmem:[#allocation4 + $0x10] sm:$0xff] %vm4476_vm3, %v4465_v60  ;;  %v4455_v22 = vadd.f32 %v8538_v35, %v4436_v61  ;;  %v7154_v27 = vadd.f32 %v7014_v6, %v6774_v29  ;;  %v4375_v47 = vpop.f32.mrb[5].mxu0 }
 0x219   : > { %4477 = vst.msk [vmem:[#allocation4 + $0x8] sm:$0xff] %vm4476_vm3, %v4464_v28  ;;  %v4454_v48 = vadd.f32 %v8538_v35, %v4435_v1  ;;  %v7155_v62 = vadd.f32 %v4375_v47, %v2095_v11 }
 0x21a   : > { %v4467_v63 = vmax.f32 %v4455_v22, 0.0  ;;  %v4438_v9 = vmul.f32 %v7154_v27, %v8533_v8 }
 0x21b   : > { %v4466_v18 = vmax.f32 %v4454_v48, 0.0  ;;  %v4437_v24 = vmul.f32 %v7155_v62, %v8533_v8  ;;  %v7017_v21 = vpop.f32.mrb[6].mxu0 }
 0x21c   : > { %4480 = vst.msk [vmem:[#allocation4 + $0x30] sm:$0xff] %vm4476_vm3, %v4467_v63  ;;  %v4457_v31 = vadd.f32 %v8538_v35, %v4438_v9  ;;  %v7156_v23 = vadd.f32 %v7017_v21, %v6777_v12  ;;  %v4385_v26 = vpop.f32.mrb[7].mxu0 }
 0x21d   : > { %4479 = vst.msk [vmem:[#allocation4 + $0x28] sm:$0xff] %vm4476_vm3, %v4466_v18  ;;  %v4456_v33 = vadd.f32 %v8538_v35, %v4437_v24  ;;  %v7157_v36 = vadd.f32 %v4385_v26, %v2105_v14 }
 0x21e   : > { %v4469_v10 = vmax.f32 %v4457_v31, 0.0  ;;  %v4440_v15 = vmul.f32 %v7156_v23, %v8533_v8 }
 0x21f   : > { %v4468_v38 = vmax.f32 %v4456_v33, 0.0  ;;  %v4439_v39 = vmul.f32 %v7157_v36, %v8533_v8  ;;  %v7020_v40 = vpop.f32.mrb[8].mxu0 }
 0x220   : > { %4482 = vst.msk [vmem:[#allocation4 + $0x50] sm:$0xff] %vm4476_vm3, %v4469_v10  ;;  %v4459_v44 = vadd.f32 %v8538_v35, %v4440_v15  ;;  %v7158_v46 = vadd.f32 %v7020_v40, %v6780_v17  ;;  %v4395_v50 = vpop.f32.mrb[9].mxu0 }
 0x221   : > { %4481 = vst.msk [vmem:[#allocation4 + $0x48] sm:$0xff] %vm4476_vm3, %v4468_v38  ;;  %v4458_v53 = vadd.f32 %v8538_v35, %v4439_v39  ;;  %v7159_v54 = vadd.f32 %v4395_v50, %v2115_v19 }
 0x222   : > { %v4471_v55 = vmax.f32 %v4459_v44, 0.0  ;;  %v4442_v56 = vmul.f32 %v7158_v46, %v8533_v8 }
 0x223   : > { %v4470_v57 = vmax.f32 %v4458_v53, 0.0  ;;  %v4441_v58 = vmul.f32 %v7159_v54, %v8533_v8  ;;  %v7023_v59 = vpop.f32.mrb[10].mxu0 }
 0x224   : > { %4484 = vst.msk [vmem:[#allocation4 + $0x70] sm:$0xff] %vm4476_vm3, %v4471_v55  ;;  %v4461_v0 = vadd.f32 %v8538_v35, %v4442_v56  ;;  %v7160_v2 = vadd.f32 %v7023_v59, %v6783_v20  ;;  %v4405_v3 = vpop.f32.mrb[11].mxu0 }
 0x225   : > { %4483 = vst.msk [vmem:[#allocation4 + $0x68] sm:$0xff] %vm4476_vm3, %v4470_v57  ;;  %v4460_v4 = vadd.f32 %v8538_v35, %v4441_v58  ;;  %v7161_v16 = vadd.f32 %v4405_v3, %v8528_v25  ;;  %v7509_v25 = vmov (!%p6257_p13), 0.0  }
 0x226   : > { %v4473_v5 = vmax.f32 %v4461_v0, 0.0  ;;  %v4444_v29 = vmul.f32 %v7160_v2, %v8533_v8  ;;  %4492 = vst.msk [vmem:[#allocation4 + $0x8] sm:$0xff] (!%p6257_p13), %vm4476_vm3, %v7509_v25  ;;  %4493 = vst.msk [vmem:[#allocation4 + $0x10] sm:$0xff] (!%p6257_p13), %vm4476_vm3, %v7509_v25 }
 0x227   : > { %v4472_v11 = vmax.f32 %v4460_v4, 0.0  ;;  %v4443_v12 = vmul.f32 %v7161_v16, %v8533_v8  ;;  %4491 = sbr.rel (%p6257_p13) target bundleno = 558 (0x22e), region = 60 }
 0x228   : > { %4486 = vst.msk [vmem:[#allocation4 + $0x90] sm:$0xff] %vm4476_vm3, %v4473_v5  ;;  %v4463_v14 = vadd.f32 %v8538_v35, %v4444_v29 }
 0x229   : > { %4485 = vst.msk [vmem:[#allocation4 + $0x88] sm:$0xff] %vm4476_vm3, %v4472_v11  ;;  %v4462_v17 = vadd.f32 %v8538_v35, %v4443_v12 }
 0x22a   : > { %v4475_v19 = vmax.f32 %v4463_v14, 0.0 }
 0x22b   : > { %v4474_v20 = vmax.f32 %v4462_v17, 0.0 }
 0x22c   : > { %4488 = vst.msk [vmem:[#allocation4 + $0xb0] sm:$0xff] %vm4476_vm3, %v4475_v19 }
 0x22d   : > { %4487 = vst.msk [vmem:[#allocation4 + $0xa8] sm:$0xff] %vm4476_vm3, %v4474_v20 }
 0x22e PF: > { %p6258_p0 = scmp.ne.s32.totalorder %s7488_s30, 3 }
 0x22f   : > { %v7510_v30 = vmov (!%p6258_p0), 0.0  }
 0x230   : > { %4496 = sbr.rel (%p6258_p0) target bundleno = 567 (0x237), region = 64  ;;  %4498 = vst.msk [vmem:[#allocation4 + $0xa8] sm:$0xff] (!%p6258_p0), %vm4476_vm3, %v7510_v30  ;;  %4499 = vst.msk [vmem:[#allocation4 + $0xb0] sm:$0xff] (!%p6258_p0), %vm4476_vm3, %v7510_v30 }
 0x237 PF: > { %v6259_v8 = vld [vmem:[%s8815_s4 + $0x8] sm:$0xff]  ;;  %v4523_v34 = vld [vmem:[#allocation4 + $0x10] sm:$0xff]  ;;  %vm4500_vm4 = vcmask 57344   ;;  %v4521_v35 = vld [vmem:[%s8815_s4] sm:$0xff] }
 0x238   : > { %v4522_v32 = vld [vmem:[#allocation4 + $0x8] sm:$0xff]  ;;  %7024 = vmatprep.subr.mxu1 %v6259_v8  ;;  %4501 = vst.msk [vmem:[#allocation4 + $0x7] sm:$0x1] %vm4500_vm4, %v7508_v7  ;;  %4502 = vst.msk [vmem:[#allocation4 + $0x27] sm:$0x1] %vm4500_vm4, %v7508_v7  ;;  %v6276_v41 = vld [vmem:[%s8815_s4 + $0x10] sm:$0xff] }
 0x239   : > { %7026 = vmatprep.mubr.msk.f32.mxu1 %vm4476_vm3, %v4522_v32  ;;  %v8590_v37 = vld [vmem:[#allocation4 + $0x28] sm:$0xff]  ;;  %4503 = vst.msk [vmem:[#allocation4 + $0x47] sm:$0x1] %vm4500_vm4, %v7508_v7  ;;  %4504 = vst.msk [vmem:[#allocation4 + $0x67] sm:$0x1] %vm4500_vm4, %v7508_v7  ;;  %7025 = vmatpush3.msra.mxu1 %v6259_v8  ;;  %v8622_v42 = vld [vmem:[#allocation4 + $0x30] sm:$0xff] }
 0x23a   : > { %4505 = vst.msk [vmem:[#allocation4 + $0x87] sm:$0x1] %vm4500_vm4, %v7508_v7  ;;  %4506 = vst.msk [vmem:[#allocation4 + $0xa7] sm:$0x1] %vm4500_vm4, %v7508_v7  ;;  %7027 = vmatmul.mubr.msk.f32.vlgmr.msra.gmra.mrb[12].mxu1 %vm4476_vm3, %v4523_v34  ;;  %7038 = vmatprep.subr.mxu1 %v4521_v35  ;;  %v8624_v43 = vld [vmem:[#allocation4 + $0x48] sm:$0xff]  ;;  %v8638_v49 = vld [vmem:[#allocation4 + $0x70] sm:$0xff] }
 0x23b   : > { %4507 = vst.msk [vmem:[#allocation4 + $0x18] sm:$0x1] %vm4500_vm4, %v7508_v7  ;;  %4508 = vst.msk [vmem:[#allocation4 + $0x38] sm:$0x1] %vm4500_vm4, %v7508_v7  ;;  %7039 = vmatpush3.msra.mxu1 %v4521_v35  ;;  %7029 = vmatprep.mubr.msk.f32.mxu1 %vm4476_vm3, %v8590_v37  ;;  %v8632_v45 = vld [vmem:[#allocation4 + $0x68] sm:$0xff]  ;;  %v6285_v60 = vld [vmem:[%s8815_s4 + $0x18] sm:$0xff] }
 0x23c   : > { %4509 = vst.msk [vmem:[#allocation4 + $0x58] sm:$0x1] %vm4500_vm4, %v7508_v7  ;;  %4510 = vst.msk [vmem:[#allocation4 + $0x78] sm:$0x1] %vm4500_vm4, %v7508_v7  ;;  %7052 = vmatprep.subr.mxu1 %v6276_v41  ;;  %v4514_v51 = vld [vmem:[#allocation4 + $0xf] sm:$0xff]  ;;  %v6294_v62 = vld [vmem:[%s8815_s4 + $0x20] sm:$0xff] }
 0x23d   : > { %4511 = vst.msk [vmem:[#allocation4 + $0x98] sm:$0x1] %vm4500_vm4, %v7508_v7  ;;  %4512 = vst.msk [vmem:[#allocation4 + $0xb8] sm:$0x1] %vm4500_vm4, %v7508_v7  ;;  %v8630_v7 = vld [vmem:[#allocation4 + $0x50] sm:$0xff]  ;;  %v6303_v31 = vld [vmem:[%s8815_s4 + $0x28] sm:$0xff] }
 0x23e   : > { %7030 = vmatmul.mubr.msk.f32.gmra.mrb[14].mxu1 %vm4476_vm3, %v8622_v42  ;;  %v4516_v61 = vld [vmem:[#allocation4 + $0x2f] sm:$0xff]  ;;  %v6321_v15 = vld [vmem:[%s8815_s4 + $0x38] sm:$0xff]  ;;  %v6330_v40 = vld [vmem:[%s8815_s4 + $0x40] sm:$0xff] }
 0x23f   : > { %7032 = vmatprep.mubr.msk.f32.mxu1 %vm4476_vm3, %v8624_v43  ;;  %v4513_v13 = vld [vmem:[#allocation4 + $0x7] sm:$0xff]  ;;  %v8653_v1 = vld [vmem:[#allocation4 + $0x4f] sm:$0xff]  ;;  %v6339_v56 = vld [vmem:[%s8818_s7] ss:$0 sm:$0xff] }
 0x240   : > { %v4515_v52 = vld [vmem:[#allocation4 + $0x27] sm:$0xff]  ;;  %v8661_v22 = vld [vmem:[#allocation4 + $0x6f] sm:$0xff]  ;;  %v6340_v58 = vld [vmem:[%s8819_s8] ss:$0 sm:$0xff] }
 0x241   : > { %v8648_v28 = vld [vmem:[#allocation4 + $0x47] sm:$0xff]  ;;  %v4945_v26 = vld [vmem:[#allocation4 + $0x8f] sm:$0xff] }
 0x242   : > { %7033 = vmatmul.mubr.msk.f32.gmra.mrb[16].mxu1 %vm4476_vm3, %v8630_v7  ;;  %v8655_v6 = vld [vmem:[#allocation4 + $0x67] sm:$0xff]  ;;  %v4791_v47 = vld [vmem:[#allocation4 + $0x11] sm:$0xff] }
 0x243   : > { %7035 = vmatprep.mubr.msk.f32.mxu1 %vm4476_vm3, %v8632_v45  ;;  %v4790_v27 = vld [vmem:[#allocation4 + $0x9] sm:$0xff]  ;;  %v4793_v63 = vld [vmem:[#allocation4 + $0x31] sm:$0xff] }
 0x244   : > { %v4792_v48 = vld [vmem:[#allocation4 + $0x29] sm:$0xff]  ;;  %v8676_v18 = vld [vmem:[#allocation4 + $0x51] sm:$0xff] }
 0x245   : > { %v8671_v9 = vld [vmem:[#allocation4 + $0x49] sm:$0xff]  ;;  %v8684_v21 = vld [vmem:[#allocation4 + $0x71] sm:$0xff] }
 0x246   : > { %7036 = vmatmul.mubr.msk.f32.gmra.mrb[18].mxu1 %vm4476_vm3, %v8638_v49  ;;  %v8678_v24 = vld [vmem:[#allocation4 + $0x69] sm:$0xff]  ;;  %v5239_v39 = vld [vmem:[#allocation4 + $0x91] sm:$0xff] }
 0x247   : > { %7040 = vmatprep.mubr.msk.f32.mxu1 %vm4476_vm3, %v4513_v13  ;;  %v4944_v23 = vld [vmem:[#allocation4 + $0x87] sm:$0xff]  ;;  %v6312_v33 = vld [vmem:[%s8815_s4 + $0x30] sm:$0xff] }
 0x248   : > { %v5091_v36 = vld [vmem:[#allocation4 + $0x88] sm:$0xff]  ;;  %v5092_v10 = vld [vmem:[#allocation4 + $0x90] sm:$0xff] }
 0x249   : > { %v5238_v38 = vld [vmem:[#allocation4 + $0x89] sm:$0xff]  ;;  %v5681_v55 = vld [vmem:[#allocation4 + $0xb1] sm:$0xff] }
 0x24a   : > { %7041 = vmatmul.mubr.msk.f32.vlgmr.msra.gmra.mrb[12].mxu1 %vm4476_vm3, %v4514_v51  ;;  %v5386_v44 = vld [vmem:[#allocation4 + $0xa7] sm:$0xff]  ;;  %v5387_v46 = vld [vmem:[#allocation4 + $0xaf] sm:$0xff] }
 0x24b   : > { %7053 = vmatpush3.msra.mxu1 %v6276_v41  ;;  %7043 = vmatprep.mubr.msk.f32.mxu1 %vm4476_vm3, %v4515_v52  ;;  %v5533_v50 = vld [vmem:[#allocation4 + $0xa8] sm:$0xff]  ;;  %v5534_v53 = vld [vmem:[#allocation4 + $0xb0] sm:$0xff] }
 0x24c   : > { %7066 = vmatprep.subr.mxu1 %v6285_v60  ;;  %v5680_v54 = vld [vmem:[#allocation4 + $0xa9] sm:$0xff] }
 0x24e   : > { %7044 = vmatmul.mubr.msk.f32.gmra.mrb[14].mxu1 %vm4476_vm3, %v4516_v61 }
 0x24f   : > { %7046 = vmatprep.mubr.msk.f32.mxu1 %vm4476_vm3, %v8648_v28 }
 0x252   : > { %7047 = vmatmul.mubr.msk.f32.gmra.mrb[16].mxu1 %vm4476_vm3, %v8653_v1 }
 0x253   : > { %7049 = vmatprep.mubr.msk.f32.mxu1 %vm4476_vm3, %v8655_v6 }
 0x256   : > { %7050 = vmatmul.mubr.msk.f32.gmra.mrb[18].mxu1 %vm4476_vm3, %v8661_v22 }
 0x257   : > { %7054 = vmatprep.mubr.msk.f32.mxu1 %vm4476_vm3, %v4790_v27 }
 0x25a   : > { %7055 = vmatmul.mubr.msk.f32.vlgmr.msra.gmra.mrb[12].mxu1 %vm4476_vm3, %v4791_v47 }
 0x25b   : > { %7067 = vmatpush3.msra.mxu1 %v6285_v60  ;;  %7057 = vmatprep.mubr.msk.f32.mxu1 %vm4476_vm3, %v4792_v48 }
 0x25c   : > { %7080 = vmatprep.subr.mxu1 %v6294_v62 }
 0x25e   : > { %7058 = vmatmul.mubr.msk.f32.gmra.mrb[14].mxu1 %vm4476_vm3, %v4793_v63 }
 0x25f   : > { %7060 = vmatprep.mubr.msk.f32.mxu1 %vm4476_vm3, %v8671_v9 }
 0x262   : > { %7061 = vmatmul.mubr.msk.f32.gmra.mrb[16].mxu1 %vm4476_vm3, %v8676_v18 }
 0x263   : > { %7063 = vmatprep.mubr.msk.f32.mxu1 %vm4476_vm3, %v8678_v24 }
 0x266   : > { %7064 = vmatmul.mubr.msk.f32.gmra.mrb[18].mxu1 %vm4476_vm3, %v8684_v21 }
 0x267   : > { %7068 = vmatprep.mubr.msk.f32.mxu1 %vm4476_vm3, %v4515_v52 }
 0x26a   : > { %7069 = vmatmul.mubr.msk.f32.vlgmr.msra.gmra.mrb[12].mxu1 %vm4476_vm3, %v4516_v61 }
 0x26b   : > { %7081 = vmatpush3.msra.mxu1 %v6294_v62  ;;  %7071 = vmatprep.mubr.msk.f32.mxu1 %vm4476_vm3, %v8648_v28 }
 0x26c   : > { %7094 = vmatprep.subr.mxu1 %v6303_v31 }
 0x26e   : > { %7072 = vmatmul.mubr.msk.f32.gmra.mrb[14].mxu1 %vm4476_vm3, %v8653_v1 }
 0x26f   : > { %7074 = vmatprep.mubr.msk.f32.mxu1 %vm4476_vm3, %v8655_v6 }
 0x272   : > { %7075 = vmatmul.mubr.msk.f32.gmra.mrb[16].mxu1 %vm4476_vm3, %v8661_v22 }
 0x273   : > { %7077 = vmatprep.mubr.msk.f32.mxu1 %vm4476_vm3, %v4944_v23 }
 0x276   : > { %7078 = vmatmul.mubr.msk.f32.gmra.mrb[18].mxu1 %vm4476_vm3, %v4945_v26 }
 0x277   : > { %7082 = vmatprep.mubr.msk.f32.mxu1 %vm4476_vm3, %v8590_v37 }
 0x27a   : > { %7083 = vmatmul.mubr.msk.f32.vlgmr.msra.gmra.mrb[12].mxu1 %vm4476_vm3, %v8622_v42 }
 0x27b   : > { %7095 = vmatpush3.msra.mxu1 %v6303_v31  ;;  %7085 = vmatprep.mubr.msk.f32.mxu1 %vm4476_vm3, %v8624_v43 }
 0x27c   : > { %7108 = vmatprep.subr.mxu1 %v6312_v33 }
 0x27e   : > { %7086 = vmatmul.mubr.msk.f32.gmra.mrb[14].mxu1 %vm4476_vm3, %v8630_v7 }
 0x27f   : > { %7088 = vmatprep.mubr.msk.f32.mxu1 %vm4476_vm3, %v8632_v45 }
 0x282   : > { %7089 = vmatmul.mubr.msk.f32.gmra.mrb[16].mxu1 %vm4476_vm3, %v8638_v49 }
 0x283   : > { %7091 = vmatprep.mubr.msk.f32.mxu1 %vm4476_vm3, %v5091_v36 }
 0x286   : > { %7092 = vmatmul.mubr.msk.f32.gmra.mrb[18].mxu1 %vm4476_vm3, %v5092_v10 }
 0x287   : > { %7096 = vmatprep.mubr.msk.f32.mxu1 %vm4476_vm3, %v4792_v48 }
 0x28a   : > { %7097 = vmatmul.mubr.msk.f32.vlgmr.msra.gmra.mrb[12].mxu1 %vm4476_vm3, %v4793_v63 }
 0x28b   : > { %7109 = vmatpush3.msra.mxu1 %v6312_v33  ;;  %7099 = vmatprep.mubr.msk.f32.mxu1 %vm4476_vm3, %v8671_v9 }
 0x28c   : > { %7122 = vmatprep.subr.mxu1 %v6321_v15 }
 0x28e   : > { %7100 = vmatmul.mubr.msk.f32.gmra.mrb[14].mxu1 %vm4476_vm3, %v8676_v18 }
 0x28f   : > { %7102 = vmatprep.mubr.msk.f32.mxu1 %vm4476_vm3, %v8678_v24 }
 0x292   : > { %7103 = vmatmul.mubr.msk.f32.gmra.mrb[16].mxu1 %vm4476_vm3, %v8684_v21 }
 0x293   : > { %7105 = vmatprep.mubr.msk.f32.mxu1 %vm4476_vm3, %v5238_v38 }
 0x296   : > { %7106 = vmatmul.mubr.msk.f32.gmra.mrb[18].mxu1 %vm4476_vm3, %v5239_v39 }
 0x297   : > { %7110 = vmatprep.mubr.msk.f32.mxu1 %vm4476_vm3, %v8648_v28 }
 0x29a   : > { %7111 = vmatmul.mubr.msk.f32.vlgmr.msra.gmra.mrb[12].mxu1 %vm4476_vm3, %v8653_v1 }
 0x29b   : > { %7123 = vmatpush3.msra.mxu1 %v6321_v15  ;;  %7113 = vmatprep.mubr.msk.f32.mxu1 %vm4476_vm3, %v8655_v6 }
 0x29c   : > { %7136 = vmatprep.subr.mxu1 %v6330_v40 }
 0x29e   : > { %7114 = vmatmul.mubr.msk.f32.gmra.mrb[14].mxu1 %vm4476_vm3, %v8661_v22 }
 0x29f   : > { %7116 = vmatprep.mubr.msk.f32.mxu1 %vm4476_vm3, %v4944_v23 }
 0x2a2   : > { %7117 = vmatmul.mubr.msk.f32.gmra.mrb[16].mxu1 %vm4476_vm3, %v4945_v26 }
 0x2a3   : > { %7119 = vmatprep.mubr.msk.f32.mxu1 %vm4476_vm3, %v5386_v44 }
 0x2a6   : > { %7120 = vmatmul.mubr.msk.f32.gmra.mrb[18].mxu1 %vm4476_vm3, %v5387_v46 }
 0x2a7   : > { %7124 = vmatprep.mubr.msk.f32.mxu1 %vm4476_vm3, %v8624_v43 }
 0x2aa   : > { %7125 = vmatmul.mubr.msk.f32.vlgmr.msra.gmra.mrb[12].mxu1 %vm4476_vm3, %v8630_v7 }
 0x2ab   : > { %7137 = vmatpush3.msra.mxu1 %v6330_v40  ;;  %7127 = vmatprep.mubr.msk.f32.mxu1 %vm4476_vm3, %v8632_v45 }
 0x2ae   : > { %7128 = vmatmul.mubr.msk.f32.gmra.mrb[14].mxu1 %vm4476_vm3, %v8638_v49 }
 0x2af   : > { %7130 = vmatprep.mubr.msk.f32.mxu1 %vm4476_vm3, %v5091_v36 }
 0x2b2   : > { %7131 = vmatmul.mubr.msk.f32.gmra.mrb[16].mxu1 %vm4476_vm3, %v5092_v10 }
 0x2b3   : > { %7133 = vmatprep.mubr.msk.f32.mxu1 %vm4476_vm3, %v5533_v50 }
 0x2b6   : > { %7134 = vmatmul.mubr.msk.f32.gmra.mrb[18].mxu1 %vm4476_vm3, %v5534_v53 }
 0x2b7   : > { %7138 = vmatprep.mubr.msk.f32.mxu1 %vm4476_vm3, %v8671_v9 }
 0x2ba   : > { %7139 = vmatmul.mubr.msk.f32.vlgmr.msra.gmra.mrb[12].mxu1 %vm4476_vm3, %v8676_v18 }
 0x2bb   : > { %7141 = vmatprep.mubr.msk.f32.mxu1 %vm4476_vm3, %v8678_v24 }
 0x2be   : > { %7142 = vmatmul.mubr.msk.f32.gmra.mrb[14].mxu1 %vm4476_vm3, %v8684_v21 }
 0x2bf   : > { %7144 = vmatprep.mubr.msk.f32.mxu1 %vm4476_vm3, %v5238_v38 }
 0x2c2   : > { %7145 = vmatmul.mubr.msk.f32.gmra.mrb[16].mxu1 %vm4476_vm3, %v5239_v39 }
 0x2c3   : > { %7147 = vmatprep.mubr.msk.f32.mxu1 %vm4476_vm3, %v5680_v54 }
 0x2c6   : > { %7148 = vmatmul.mubr.msk.f32.gmra.mrb[18].mxu1 %vm4476_vm3, %v5681_v55 }
 0x38d   : > { %v7140_v57 = vpop.f32.mrb[12].mxu1 }
 0x38e   : > { %v5829_v59 = vmul.f32 %v7140_v57, %v6339_v56  ;;  %v5774_v0 = vpop.f32.mrb[13].mxu1 }
 0x38f   : > { %v5828_v2 = vmul.f32 %v6339_v56, %v5774_v0 }
 0x390   : > { %v5844_v3 = vadd.f32 %v6340_v58, %v5829_v59 }
 0x391   : > { %v5843_v4 = vadd.f32 %v6340_v58, %v5828_v2  ;;  %v7143_v16 = vpop.f32.mrb[14].mxu1 }
 0x392   : > { %v5852_v5 = vmax.f32 %v5844_v3, 0.0  ;;  %v5831_v29 = vmul.f32 %v7143_v16, %v6339_v56  ;;  %v5784_v11 = vpop.f32.mrb[15].mxu1 }
 0x393   : > { %v5851_v12 = vmax.f32 %v5843_v4, 0.0  ;;  %v5830_v14 = vmul.f32 %v6339_v56, %v5784_v11 }
 0x394   : > { %5860 = vst.msk [vmem:[%s7807_s27 + $0x8] sm:$0xff] %vm4476_vm3, %v5852_v5  ;;  %v5846_v17 = vadd.f32 %v6340_v58, %v5831_v29 }
 0x395   : > { %5859 = vst.msk [vmem:[%s7807_s27] sm:$0xff] %vm4476_vm3, %v5851_v12  ;;  %v5845_v19 = vadd.f32 %v6340_v58, %v5830_v14  ;;  %v7146_v20 = vpop.f32.mrb[16].mxu1 }
 0x396   : > { %v5854_v25 = vmax.f32 %v5846_v17, 0.0  ;;  %v5833_v30 = vmul.f32 %v7146_v20, %v6339_v56  ;;  %v5794_v8 = vpop.f32.mrb[17].mxu1 }
 0x397   : > { %v5853_v32 = vmax.f32 %v5845_v19, 0.0  ;;  %v5832_v34 = vmul.f32 %v6339_v56, %v5794_v8 }
 0x398   : > { %5862 = vst.msk [vmem:[%s7807_s27 + $0x18] sm:$0xff] %vm4476_vm3, %v5854_v25  ;;  %v5848_v35 = vadd.f32 %v6340_v58, %v5833_v30 }
 0x399   : > { %5861 = vst.msk [vmem:[%s7807_s27 + $0x10] sm:$0xff] %vm4476_vm3, %v5853_v32  ;;  %v5847_v37 = vadd.f32 %v6340_v58, %v5832_v34  ;;  %v7149_v41 = vpop.f32.mrb[18].mxu1 }
 0x39a   : > { %v5856_v42 = vmax.f32 %v5848_v35, 0.0  ;;  %v5835_v43 = vmul.f32 %v7149_v41, %v6339_v56  ;;  %v5804_v7 = vpop.f32.mrb[19].mxu1 }
 0x39b   : > { %v5855_v45 = vmax.f32 %v5847_v37, 0.0  ;;  %v5834_v49 = vmul.f32 %v6339_v56, %v5804_v7 }
 0x39c   : > { %5864 = vst.msk [vmem:[%s7807_s27 + $0x28] sm:$0xff] %vm4476_vm3, %v5856_v42  ;;  %v5850_v13 = vadd.f32 %v6340_v58, %v5835_v43 }
 0x39d   : > { %5863 = vst.msk [vmem:[%s7807_s27 + $0x20] sm:$0xff] %vm4476_vm3, %v5855_v45  ;;  %v5849_v51 = vadd.f32 %v6340_v58, %v5834_v49 }
 0x39e   : > { %v5858_v52 = vmax.f32 %v5850_v13, 0.0 }
 0x39f   : > { %v5857_v60 = vmax.f32 %v5849_v51, 0.0 }
 0x3a0   : > { %5866 = vst.msk [vmem:[%s7807_s27 + $0x38] sm:$0xff] %vm4476_vm3, %v5858_v52 }
 0x3a1   : > { %5865 = vst.msk [vmem:[%s7807_s27 + $0x30] sm:$0xff] %vm4476_vm3, %v5857_v60 }
 0x3a2 PF: > { %s19_s13 = sadd.s32 1, %s7504_s13   ;;  %s8822_s30 = smov %s7496_s11 }
 0x3a3   : > { %p16_p1 = scmp.ge.s32.totalorder %s19_s13, 10   ;;  %s8823_s10 = smov %s7500_s12 }
 0x3a4   : > { %s8824_s11 = smov %s8827_s14  ;;  %s8825_s12 = smov %s8831_s15 }
 0x3a5   :  { %18 = sbr.rel (!%p16_p1) target bundleno = 3 (0x3), region = 136 }

</bundles_post_ra>
